<compile_context>
chip_gen: v7x
topology: tpu7x:2x2x1
jax: 0.10.0
libtpu: 0.0.40
codegen_flags: <defaults>
</compile_context>

<pallas_src>
import jax
import jax.numpy as jnp
from jax.experimental import pallas as pl
from jax.experimental.pallas import tpu as pltpu

WINDOW_SIZE = 16   # GRU input feature size
HIDDEN      = 32   # gru_hidden_size
NUM_CLASSES = 5
NUM_LAYERS  = 2
BATCH       = 2
SEQ         = 8

# Row offsets of each weight inside the packed bf16 weight slab.  All offsets are
# multiples of 16 (the bf16 sublane tile), so every in-kernel slice starts on a tile
# boundary.  (WINDOW_SIZE == 16 is already tile-aligned.)
R_WIH0  = 0                      # (WINDOW_SIZE, 3H)  layer-0 input projection (hoisted)
R_FUSED = R_WIH0 + WINDOW_SIZE   # (H, 6H)            [wih1 | whh0]  fused on-chain push
R_WHH1  = R_FUSED + HIDDEN       # (H, 3H)            layer-1 hh (off-chain push)
R_W1    = R_WHH1 + HIDDEN        # (2H, H)            head Linear 1
R_W2    = R_W1 + 2 * HIDDEN      # (H, C)             head Linear 2
W_ROWS  = R_W2 + HIDDEN          # 176 rows
W_COLS  = 6 * HIDDEN             # 192 cols

# Row indices inside the f32 bias slab (8, W_COLS).
B_GI0, B_FUSED, B_GH1, B_FC1, B_FC2 = 0, 1, 2, 3, 4


def _gates(gi, gh, h_prev):
    """PyTorch GRU gate math (gate order r, z, n); biases are pre-folded into gi/gh."""
    H = HIDDEN
    rz = jax.nn.sigmoid(gi[:, :2 * H] + gh[:, :2 * H])   # fused r+z sigmoid (one EUP slice)
    r = rz[:, :H]
    z = rz[:, H:]
    n = jnp.tanh(gi[:, 2 * H:] + r * gh[:, 2 * H:])
    return n + z * (h_prev - n)                          # == (1 - z) * n + z * h_prev


def gru_cls_kernel(x_ref, w_ref, b_ref, out_ref):
    """2-layer GRU over the whole sequence + MLP head + log-softmax, single invocation.

    x_ref : (S*B, F) f32, time-major (row t*B + b == x[b, t, :])
    w_ref : (W_ROWS, W_COLS) bf16 packed weight slab
    b_ref : (8, W_COLS)      f32  packed bias slab
    out   : (B, NUM_CLASSES) f32  log-probs
    """
    H = HIDDEN
    B, C = out_ref.shape
    SB, F = x_ref.shape
    S = SB // B

    # ---- static, tile-aligned weight / bias views (zero-cost slices) ----------------
    wih0   = w_ref[R_WIH0:R_WIH0 + F, :3 * H]           # (F, 3H)
    wfused = w_ref[R_FUSED:R_FUSED + H, :6 * H]         # (H, 6H) = [wih1 | whh0]
    whh1   = w_ref[R_WHH1:R_WHH1 + H, :3 * H]           # (H, 3H)
    w1     = w_ref[R_W1:R_W1 + 2 * H, :H]               # (2H, H)
    w2     = w_ref[R_W2:R_W2 + H, :C]                   # (H, C)

    b_gi0   = b_ref[B_GI0:B_GI0 + 1, :3 * H]            # bih0 + [bhh0_rz, 0]
    b_fused = b_ref[B_FUSED:B_FUSED + 1, :6 * H]        # [bih1+[bhh1_rz,0] | [0,0,bhh0_n]]
    b_gh1   = b_ref[B_GH1:B_GH1 + 1, :3 * H]            # [0, 0, bhh1_n]
    b_fc1   = b_ref[B_FC1:B_FC1 + 1, :H]
    b_fc2   = b_ref[B_FC2:B_FC2 + 1, :C]

    # ---- hoisted layer-0 input projection: one matmul for the whole sequence --------
    gi0_all = (jnp.dot(x_ref[...].astype(jnp.bfloat16), wih0,
                       preferred_element_type=jnp.float32) + b_gi0)      # (S*B, 3H) f32

    h0 = jnp.zeros((B, H), jnp.float32)
    h1 = jnp.zeros((B, H), jnp.float32)
    # Carried pre-activations (pre-biased).  h init is zero, so only the n-gate hh bias
    # survives in the initial gh's (the rz parts were folded into the gi biases).
    gh0 = jnp.zeros((B, 3 * H), jnp.float32) + b_fused[:, 3 * H:]
    gh1 = jnp.zeros((B, 3 * H), jnp.float32) + b_gh1

    # ---- recurrence: fully unrolled; ONE on-chain MXU push + ONE gate block per step -
    for t in range(S):
        # on-chain: layer-0 gates for step t (the gi0 slice has no recurrence dep,
        # so the scheduler can compute it ahead of time).
        h0 = _gates(gi0_all[t * B:(t + 1) * B, :], gh0, h0)

        # on-chain: single fused push off the fresh h0:
        #   [ gi1(t) | gh0(t+1) ] = h0 @ [wih1 | whh0] + b_fused
        fused = (jnp.dot(h0.astype(jnp.bfloat16), wfused,
                         preferred_element_type=jnp.float32) + b_fused)  # (B, 6H)
        gi1 = fused[:, :3 * H]
        gh0 = fused[:, 3 * H:]

        # off-chain: layer-1 gate math + its hh push overlap with the next step's
        # h0 path (nothing on the h0 chain reads h1 / gh1).
        h1 = _gates(gi1, gh1, h1)
        if t + 1 < S:
            gh1 = (jnp.dot(h1.astype(jnp.bfloat16), whh1,
                           preferred_element_type=jnp.float32) + b_gh1)

    # ---- head: Linear -> ReLU -> (Dropout no-op) -> Linear -> LogSoftmax ------------
    # h_n.transpose(0,1).reshape(B, -1)  ==  [h_layer0 | h_layer1] per batch row
    h_cat = jnp.concatenate([h0, h1], axis=-1)                           # (B, 2H)
    z1 = jnp.maximum(
        jnp.dot(h_cat.astype(jnp.bfloat16), w1,
                preferred_element_type=jnp.float32) + b_fc1, 0.0)        # (B, H)
    logits = (jnp.dot(z1.astype(jnp.bfloat16), w2,
                      preferred_element_type=jnp.float32) + b_fc2)       # (B, C)
    m   = jnp.max(logits, axis=-1, keepdims=True)
    lse = m + jnp.log(jnp.sum(jnp.exp(logits - m), axis=-1, keepdims=True))
    out_ref[...] = logits - lse                                          # (B, C)


def init_params(key):
    """Deterministic PyTorch-style uniform init. Weights stored pre-transposed (in, out)."""
    ks = jax.random.split(key, 12)
    kH = 1.0 / jnp.sqrt(HIDDEN)

    def u(k, shape, bound):
        return jax.random.uniform(k, shape, jnp.float32, -bound, bound)

    # GRU layer 0: weight_ih (3H, WINDOW_SIZE), weight_hh (3H, H) -> stored transposed
    wih0_t = u(ks[0], (WINDOW_SIZE, 3 * HIDDEN), kH)
    whh0_t = u(ks[1], (HIDDEN, 3 * HIDDEN), kH)
    bih0   = u(ks[2], (1, 3 * HIDDEN), kH)
    bhh0   = u(ks[3], (1, 3 * HIDDEN), kH)
    # GRU layer 1: input size = HIDDEN
    wih1_t = u(ks[4], (HIDDEN, 3 * HIDDEN), kH)
    whh1_t = u(ks[5], (HIDDEN, 3 * HIDDEN), kH)
    bih1   = u(ks[6], (1, 3 * HIDDEN), kH)
    bhh1   = u(ks[7], (1, 3 * HIDDEN), kH)
    # phase_cls Linear(2H -> H), Linear(H -> C)
    k1 = 1.0 / jnp.sqrt(2 * HIDDEN)
    w1_t = u(ks[8], (2 * HIDDEN, HIDDEN), k1)
    b1   = u(ks[9], (1, HIDDEN), k1)
    k2 = 1.0 / jnp.sqrt(HIDDEN)
    w2_t = u(ks[10], (HIDDEN, NUM_CLASSES), k2)
    b2   = u(ks[11], (1, NUM_CLASSES), k2)

    return (wih0_t, whh0_t, bih0, bhh0,
            wih1_t, whh1_t, bih1, bhh1,
            w1_t, b1, w2_t, b2)


def prepare_params(params):
    """One-time repack of PyTorch-layout params into the fused kernel slabs."""
    (wih0, whh0, bih0, bhh0, wih1, whh1, bih1, bhh1, w1, b1, w2, b2) = params
    H = HIDDEN
    zH = jnp.zeros((1, H), jnp.float32)

    # Fused on-chain weight:  h0 @ [wih1 | whh0] -> [gi1(t) | gh0(t+1)]  (dense, no zeros)
    w_fused = jnp.concatenate([wih1, whh0], axis=-1)                      # (H, 6H)

    # Bias folding: rz-gate ih+hh biases are always summed -> pre-add them; the n-gate
    # hh bias must stay with gh (it is multiplied by r inside tanh).
    b_gi0 = bih0 + jnp.concatenate([bhh0[:, :2 * H], zH], axis=-1)        # (1, 3H)
    b_fused = jnp.concatenate(
        [bih1 + jnp.concatenate([bhh1[:, :2 * H], zH], axis=-1),          # gi1 bias
         jnp.concatenate([zH, zH, bhh0[:, 2 * H:]], axis=-1)], axis=-1)   # gh0 bias
    b_gh1 = jnp.concatenate([zH, zH, bhh1[:, 2 * H:]], axis=-1)           # (1, 3H)

    # ---- single bf16 weight slab (one DMA instead of five) --------------------------
    w_slab = jnp.zeros((W_ROWS, W_COLS), jnp.bfloat16)

    def put(slab, row, w):
        return slab.at[row:row + w.shape[0], :w.shape[1]].set(w.astype(jnp.bfloat16))

    w_slab = put(w_slab, R_WIH0, wih0)
    w_slab = put(w_slab, R_FUSED, w_fused)
    w_slab = put(w_slab, R_WHH1, whh1)
    w_slab = put(w_slab, R_W1, w1)
    w_slab = put(w_slab, R_W2, w2)

    # ---- single f32 bias slab (one DMA instead of six) ------------------------------
    b_slab = jnp.zeros((8, W_COLS), jnp.float32)
    b_slab = b_slab.at[B_GI0, :3 * H].set(b_gi0[0])
    b_slab = b_slab.at[B_FUSED, :6 * H].set(b_fused[0])
    b_slab = b_slab.at[B_GH1, :3 * H].set(b_gh1[0])
    b_slab = b_slab.at[B_FC1, :H].set(b1[0])
    b_slab = b_slab.at[B_FC2, :NUM_CLASSES].set(b2[0])

    return (w_slab, b_slab)


@jax.jit
def net_forward(x_btf, kernel_params):
    """x_btf: (batch, seq, WINDOW_SIZE), batch_first like the PyTorch module."""
    B, S, F = x_btf.shape
    # Time-major flat layout (cheap XLA relayout in HBM): row t*B + b == x[b, t, :].
    x_tm = jnp.transpose(x_btf.astype(jnp.float32), (1, 0, 2)).reshape(S * B, F)
    w_slab, b_slab = kernel_params
    vmem = pltpu.MemorySpace.VMEM
    return pl.pallas_call(
        gru_cls_kernel,
        out_shape=jax.ShapeDtypeStruct((B, NUM_CLASSES), jnp.float32),
        in_specs=[pl.BlockSpec(memory_space=vmem)] * 3,
        out_specs=pl.BlockSpec(memory_space=vmem),
    )(x_tm, w_slab, b_slab)


def net_forward_ref(x_btf, params):
    """Pure-JAX f32 reference (identical math to the PyTorch module) for correctness."""
    (wih0, whh0, bih0, bhh0, wih1, whh1, bih1, bhh1, w1, b1, w2, b2) = params
    B = x_btf.shape[0]
    h0 = jnp.zeros((B, HIDDEN), jnp.float32)
    h1 = jnp.zeros((B, HIDDEN), jnp.float32)

    def cell(x_t, h_prev, wih_t, whh_t, bi, bh):
        H = HIDDEN
        gi = x_t @ wih_t + bi
        gh = h_prev @ whh_t + bh
        r = jax.nn.sigmoid(gi[:, :H] + gh[:, :H])
        z = jax.nn.sigmoid(gi[:, H:2 * H] + gh[:, H:2 * H])
        n = jnp.tanh(gi[:, 2 * H:] + r * gh[:, 2 * H:])
        return (1.0 - z) * n + z * h_prev

    for t in range(x_btf.shape[1]):
        x_t = x_btf[:, t, :].astype(jnp.float32)
        h0 = cell(x_t, h0, wih0, whh0, bih0, bhh0)
        h1 = cell(h0, h1, wih1, whh1, bih1, bhh1)

    h_cat = jnp.concatenate([h0, h1], axis=-1)
    z1 = jnp.maximum(h_cat @ w1 + b1, 0.0)
    logits = z1 @ w2 + b2
    return logits - jax.scipy.special.logsumexp(logits, axis=-1, keepdims=True)


if __name__ == "__main__":
    key = jax.random.PRNGKey(0)
    kx, kp = jax.random.split(key)
    x = jax.random.normal(kx, (BATCH, SEQ, WINDOW_SIZE), jnp.float32)

    params = init_params(kp)                    # PyTorch-layout weights
    kernel_params = prepare_params(params)      # one-time fused kernel slabs (bf16/f32)

    out = net_forward(x, kernel_params)
    out = jax.block_until_ready(out)

    ref = net_forward_ref(x, params)
    assert out.shape == (BATCH, NUM_CLASSES)
    assert jnp.all(jnp.isfinite(out))
    # bf16 MXU operands with f32 accumulation vs. the pure-f32 reference: 2e-2 is the
    # standard tolerance for this mixed-precision comparison (observed error << this).
    assert jnp.allclose(out, ref, atol=2e-2, rtol=2e-2), (out, ref)

    print("KERNEL_OK")
</pallas_src>

<mosaic_0001>
module attributes {stable_mosaic.version = 11 : i64} {
  func.func @gru_cls_kernel(%arg0: memref<16x16xf32, #tpu.memory_space<vmem>>, %arg1: memref<176x192xbf16, #tpu.memory_space<vmem>>, %arg2: memref<8x192xf32, #tpu.memory_space<vmem>>, %arg3: memref<2x5xf32, #tpu.memory_space<vmem>>) attributes {dimension_semantics = [], scalar_prefetch = 0 : i64, scratch_operands = 0 : i64, tpu.core_type = #tpu.core_type<tc>} {
    %c0 = arith.constant 0 : index
    %c0_0 = arith.constant 0 : index
    %0 = vector.load %arg1[%c0, %c0_0] : memref<176x192xbf16, #tpu.memory_space<vmem>>, vector<16x96xbf16>
    %c16 = arith.constant 16 : index
    %c0_1 = arith.constant 0 : index
    %1 = vector.load %arg1[%c16, %c0_1] : memref<176x192xbf16, #tpu.memory_space<vmem>>, vector<32x192xbf16>
    %c48 = arith.constant 48 : index
    %c0_2 = arith.constant 0 : index
    %2 = vector.load %arg1[%c48, %c0_2] : memref<176x192xbf16, #tpu.memory_space<vmem>>, vector<32x96xbf16>
    %c80 = arith.constant 80 : index
    %c0_3 = arith.constant 0 : index
    %3 = vector.load %arg1[%c80, %c0_3] : memref<176x192xbf16, #tpu.memory_space<vmem>>, vector<64x32xbf16>
    %c144 = arith.constant 144 : index
    %c0_4 = arith.constant 0 : index
    %4 = vector.load %arg1[%c144, %c0_4] : memref<176x192xbf16, #tpu.memory_space<vmem>>, vector<32x5xbf16>
    %c0_5 = arith.constant 0 : index
    %c0_6 = arith.constant 0 : index
    %5 = vector.load %arg2[%c0_5, %c0_6] : memref<8x192xf32, #tpu.memory_space<vmem>>, vector<1x96xf32>
    %c1 = arith.constant 1 : index
    %c0_7 = arith.constant 0 : index
    %6 = vector.load %arg2[%c1, %c0_7] : memref<8x192xf32, #tpu.memory_space<vmem>>, vector<1x192xf32>
    %c2 = arith.constant 2 : index
    %c0_8 = arith.constant 0 : index
    %7 = vector.load %arg2[%c2, %c0_8] : memref<8x192xf32, #tpu.memory_space<vmem>>, vector<1x96xf32>
    %c3 = arith.constant 3 : index
    %c0_9 = arith.constant 0 : index
    %8 = vector.load %arg2[%c3, %c0_9] : memref<8x192xf32, #tpu.memory_space<vmem>>, vector<1x32xf32>
    %c4 = arith.constant 4 : index
    %c0_10 = arith.constant 0 : index
    %9 = vector.load %arg2[%c4, %c0_10] : memref<8x192xf32, #tpu.memory_space<vmem>>, vector<1x5xf32>
    %c0_11 = arith.constant 0 : index
    %c0_12 = arith.constant 0 : index
    %10 = vector.load %arg0[%c0_11, %c0_12] : memref<16x16xf32, #tpu.memory_space<vmem>>, vector<16x16xf32>
    %11 = arith.truncf %10 : vector<16x16xf32> to vector<16x16xbf16>
    %cst = arith.constant dense<0.000000e+00> : vector<16x96xf32>
    %12 = tpu.matmul %11, %0, %cst {dimension_numbers = #tpu.dot_dimension_numbers<[1], [0], [0], [1], [0, 0, 1, 1], [], []>} : vector<16x16xbf16>, vector<16x96xbf16>, vector<16x96xf32> -> vector<16x96xf32>
    %13 = vector.broadcast %5 : vector<1x96xf32> to vector<16x96xf32>
    %14 = arith.addf %12, %13 : vector<16x96xf32>
    %cst_13 = arith.constant 0.000000e+00 : f32
    %15 = vector.broadcast %cst_13 : f32 to vector<2x32xf32>
    %cst_14 = arith.constant 0.000000e+00 : f32
    %16 = vector.broadcast %cst_14 : f32 to vector<2x32xf32>
    %cst_15 = arith.constant 0.000000e+00 : f32
    %17 = vector.broadcast %cst_15 : f32 to vector<2x96xf32>
    %18 = vector.extract_strided_slice %6 {offsets = [0, 96], sizes = [1, 96], strides = [1, 1]} : vector<1x192xf32> to vector<1x96xf32>
    %19 = vector.broadcast %18 : vector<1x96xf32> to vector<2x96xf32>
    %20 = arith.addf %17, %19 : vector<2x96xf32>
    %cst_16 = arith.constant 0.000000e+00 : f32
    %21 = vector.broadcast %cst_16 : f32 to vector<2x96xf32>
    %22 = vector.broadcast %7 : vector<1x96xf32> to vector<2x96xf32>
    %23 = arith.addf %21, %22 : vector<2x96xf32>
    %24 = vector.extract_strided_slice %14 {offsets = [0, 0], sizes = [2, 96], strides = [1, 1]} : vector<16x96xf32> to vector<2x96xf32>
    %25 = vector.extract_strided_slice %24 {offsets = [0, 0], sizes = [2, 64], strides = [1, 1]} : vector<2x96xf32> to vector<2x64xf32>
    %26 = vector.extract_strided_slice %20 {offsets = [0, 0], sizes = [2, 64], strides = [1, 1]} : vector<2x96xf32> to vector<2x64xf32>
    %27 = arith.addf %25, %26 : vector<2x64xf32>
    %28 = arith.negf %27 : vector<2x64xf32>
    %29 = math.exp %28 : vector<2x64xf32>
    %cst_17 = arith.constant 1.000000e+00 : f32
    %30 = vector.broadcast %cst_17 : f32 to vector<2x64xf32>
    %31 = arith.addf %30, %29 : vector<2x64xf32>
    %32 = arith.divf %30, %31 : vector<2x64xf32>
    %33 = vector.extract_strided_slice %32 {offsets = [0, 0], sizes = [2, 32], strides = [1, 1]} : vector<2x64xf32> to vector<2x32xf32>
    %34 = vector.extract_strided_slice %32 {offsets = [0, 32], sizes = [2, 32], strides = [1, 1]} : vector<2x64xf32> to vector<2x32xf32>
    %35 = vector.extract_strided_slice %24 {offsets = [0, 64], sizes = [2, 32], strides = [1, 1]} : vector<2x96xf32> to vector<2x32xf32>
    %36 = vector.extract_strided_slice %20 {offsets = [0, 64], sizes = [2, 32], strides = [1, 1]} : vector<2x96xf32> to vector<2x32xf32>
    %37 = arith.mulf %33, %36 : vector<2x32xf32>
    %38 = arith.addf %35, %37 : vector<2x32xf32>
    %39 = math.tanh %38 : vector<2x32xf32>
    %40 = arith.subf %15, %39 : vector<2x32xf32>
    %41 = arith.mulf %34, %40 : vector<2x32xf32>
    %42 = arith.addf %39, %41 : vector<2x32xf32>
    %43 = arith.truncf %42 : vector<2x32xf32> to vector<2x32xbf16>
    %cst_18 = arith.constant dense<0.000000e+00> : vector<2x192xf32>
    %44 = tpu.matmul %43, %1, %cst_18 {dimension_numbers = #tpu.dot_dimension_numbers<[1], [0], [0], [1], [0, 0, 1, 1], [], []>} : vector<2x32xbf16>, vector<32x192xbf16>, vector<2x192xf32> -> vector<2x192xf32>
    %45 = vector.broadcast %6 : vector<1x192xf32> to vector<2x192xf32>
    %46 = arith.addf %44, %45 : vector<2x192xf32>
    %47 = vector.extract_strided_slice %46 {offsets = [0, 0], sizes = [2, 96], strides = [1, 1]} : vector<2x192xf32> to vector<2x96xf32>
    %48 = vector.extract_strided_slice %46 {offsets = [0, 96], sizes = [2, 96], strides = [1, 1]} : vector<2x192xf32> to vector<2x96xf32>
    %49 = vector.extract_strided_slice %47 {offsets = [0, 0], sizes = [2, 64], strides = [1, 1]} : vector<2x96xf32> to vector<2x64xf32>
    %50 = vector.extract_strided_slice %23 {offsets = [0, 0], sizes = [2, 64], strides = [1, 1]} : vector<2x96xf32> to vector<2x64xf32>
    %51 = arith.addf %49, %50 : vector<2x64xf32>
    %52 = arith.negf %51 : vector<2x64xf32>
    %53 = math.exp %52 : vector<2x64xf32>
    %cst_19 = arith.constant 1.000000e+00 : f32
    %54 = vector.broadcast %cst_19 : f32 to vector<2x64xf32>
    %55 = arith.addf %54, %53 : vector<2x64xf32>
    %56 = arith.divf %54, %55 : vector<2x64xf32>
    %57 = vector.extract_strided_slice %56 {offsets = [0, 0], sizes = [2, 32], strides = [1, 1]} : vector<2x64xf32> to vector<2x32xf32>
    %58 = vector.extract_strided_slice %56 {offsets = [0, 32], sizes = [2, 32], strides = [1, 1]} : vector<2x64xf32> to vector<2x32xf32>
    %59 = vector.extract_strided_slice %47 {offsets = [0, 64], sizes = [2, 32], strides = [1, 1]} : vector<2x96xf32> to vector<2x32xf32>
    %60 = vector.extract_strided_slice %23 {offsets = [0, 64], sizes = [2, 32], strides = [1, 1]} : vector<2x96xf32> to vector<2x32xf32>
    %61 = arith.mulf %57, %60 : vector<2x32xf32>
    %62 = arith.addf %59, %61 : vector<2x32xf32>
    %63 = math.tanh %62 : vector<2x32xf32>
    %64 = arith.subf %16, %63 : vector<2x32xf32>
    %65 = arith.mulf %58, %64 : vector<2x32xf32>
    %66 = arith.addf %63, %65 : vector<2x32xf32>
    %67 = arith.truncf %66 : vector<2x32xf32> to vector<2x32xbf16>
    %cst_20 = arith.constant dense<0.000000e+00> : vector<2x96xf32>
    %68 = tpu.matmul %67, %2, %cst_20 {dimension_numbers = #tpu.dot_dimension_numbers<[1], [0], [0], [1], [0, 0, 1, 1], [], []>} : vector<2x32xbf16>, vector<32x96xbf16>, vector<2x96xf32> -> vector<2x96xf32>
    %69 = vector.broadcast %7 : vector<1x96xf32> to vector<2x96xf32>
    %70 = arith.addf %68, %69 : vector<2x96xf32>
    %71 = vector.extract_strided_slice %14 {offsets = [2, 0], sizes = [2, 96], strides = [1, 1]} : vector<16x96xf32> to vector<2x96xf32>
    %72 = vector.extract_strided_slice %71 {offsets = [0, 0], sizes = [2, 64], strides = [1, 1]} : vector<2x96xf32> to vector<2x64xf32>
    %73 = vector.extract_strided_slice %48 {offsets = [0, 0], sizes = [2, 64], strides = [1, 1]} : vector<2x96xf32> to vector<2x64xf32>
    %74 = arith.addf %72, %73 : vector<2x64xf32>
    %75 = arith.negf %74 : vector<2x64xf32>
    %76 = math.exp %75 : vector<2x64xf32>
    %cst_21 = arith.constant 1.000000e+00 : f32
    %77 = vector.broadcast %cst_21 : f32 to vector<2x64xf32>
    %78 = arith.addf %77, %76 : vector<2x64xf32>
    %79 = arith.divf %77, %78 : vector<2x64xf32>
    %80 = vector.extract_strided_slice %79 {offsets = [0, 0], sizes = [2, 32], strides = [1, 1]} : vector<2x64xf32> to vector<2x32xf32>
    %81 = vector.extract_strided_slice %79 {offsets = [0, 32], sizes = [2, 32], strides = [1, 1]} : vector<2x64xf32> to vector<2x32xf32>
    %82 = vector.extract_strided_slice %71 {offsets = [0, 64], sizes = [2, 32], strides = [1, 1]} : vector<2x96xf32> to vector<2x32xf32>
    %83 = vector.extract_strided_slice %48 {offsets = [0, 64], sizes = [2, 32], strides = [1, 1]} : vector<2x96xf32> to vector<2x32xf32>
    %84 = arith.mulf %80, %83 : vector<2x32xf32>
    %85 = arith.addf %82, %84 : vector<2x32xf32>
    %86 = math.tanh %85 : vector<2x32xf32>
    %87 = arith.subf %42, %86 : vector<2x32xf32>
    %88 = arith.mulf %81, %87 : vector<2x32xf32>
    %89 = arith.addf %86, %88 : vector<2x32xf32>
    %90 = arith.truncf %89 : vector<2x32xf32> to vector<2x32xbf16>
    %cst_22 = arith.constant dense<0.000000e+00> : vector<2x192xf32>
    %91 = tpu.matmul %90, %1, %cst_22 {dimension_numbers = #tpu.dot_dimension_numbers<[1], [0], [0], [1], [0, 0, 1, 1], [], []>} : vector<2x32xbf16>, vector<32x192xbf16>, vector<2x192xf32> -> vector<2x192xf32>
    %92 = vector.broadcast %6 : vector<1x192xf32> to vector<2x192xf32>
    %93 = arith.addf %91, %92 : vector<2x192xf32>
    %94 = vector.extract_strided_slice %93 {offsets = [0, 0], sizes = [2, 96], strides = [1, 1]} : vector<2x192xf32> to vector<2x96xf32>
    %95 = vector.extract_strided_slice %93 {offsets = [0, 96], sizes = [2, 96], strides = [1, 1]} : vector<2x192xf32> to vector<2x96xf32>
    %96 = vector.extract_strided_slice %94 {offsets = [0, 0], sizes = [2, 64], strides = [1, 1]} : vector<2x96xf32> to vector<2x64xf32>
    %97 = vector.extract_strided_slice %70 {offsets = [0, 0], sizes = [2, 64], strides = [1, 1]} : vector<2x96xf32> to vector<2x64xf32>
    %98 = arith.addf %96, %97 : vector<2x64xf32>
    %99 = arith.negf %98 : vector<2x64xf32>
    %100 = math.exp %99 : vector<2x64xf32>
    %cst_23 = arith.constant 1.000000e+00 : f32
    %101 = vector.broadcast %cst_23 : f32 to vector<2x64xf32>
    %102 = arith.addf %101, %100 : vector<2x64xf32>
    %103 = arith.divf %101, %102 : vector<2x64xf32>
    %104 = vector.extract_strided_slice %103 {offsets = [0, 0], sizes = [2, 32], strides = [1, 1]} : vector<2x64xf32> to vector<2x32xf32>
    %105 = vector.extract_strided_slice %103 {offsets = [0, 32], sizes = [2, 32], strides = [1, 1]} : vector<2x64xf32> to vector<2x32xf32>
    %106 = vector.extract_strided_slice %94 {offsets = [0, 64], sizes = [2, 32], strides = [1, 1]} : vector<2x96xf32> to vector<2x32xf32>
    %107 = vector.extract_strided_slice %70 {offsets = [0, 64], sizes = [2, 32], strides = [1, 1]} : vector<2x96xf32> to vector<2x32xf32>
    %108 = arith.mulf %104, %107 : vector<2x32xf32>
    %109 = arith.addf %106, %108 : vector<2x32xf32>
    %110 = math.tanh %109 : vector<2x32xf32>
    %111 = arith.subf %66, %110 : vector<2x32xf32>
    %112 = arith.mulf %105, %111 : vector<2x32xf32>
    %113 = arith.addf %110, %112 : vector<2x32xf32>
    %114 = arith.truncf %113 : vector<2x32xf32> to vector<2x32xbf16>
    %cst_24 = arith.constant dense<0.000000e+00> : vector<2x96xf32>
    %115 = tpu.matmul %114, %2, %cst_24 {dimension_numbers = #tpu.dot_dimension_numbers<[1], [0], [0], [1], [0, 0, 1, 1], [], []>} : vector<2x32xbf16>, vector<32x96xbf16>, vector<2x96xf32> -> vector<2x96xf32>
    %116 = vector.broadcast %7 : vector<1x96xf32> to vector<2x96xf32>
    %117 = arith.addf %115, %116 : vector<2x96xf32>
    %118 = vector.extract_strided_slice %14 {offsets = [4, 0], sizes = [2, 96], strides = [1, 1]} : vector<16x96xf32> to vector<2x96xf32>
    %119 = vector.extract_strided_slice %118 {offsets = [0, 0], sizes = [2, 64], strides = [1, 1]} : vector<2x96xf32> to vector<2x64xf32>
    %120 = vector.extract_strided_slice %95 {offsets = [0, 0], sizes = [2, 64], strides = [1, 1]} : vector<2x96xf32> to vector<2x64xf32>
    %121 = arith.addf %119, %120 : vector<2x64xf32>
    %122 = arith.negf %121 : vector<2x64xf32>
    %123 = math.exp %122 : vector<2x64xf32>
    %cst_25 = arith.constant 1.000000e+00 : f32
    %124 = vector.broadcast %cst_25 : f32 to vector<2x64xf32>
    %125 = arith.addf %124, %123 : vector<2x64xf32>
    %126 = arith.divf %124, %125 : vector<2x64xf32>
    %127 = vector.extract_strided_slice %126 {offsets = [0, 0], sizes = [2, 32], strides = [1, 1]} : vector<2x64xf32> to vector<2x32xf32>
    %128 = vector.extract_strided_slice %126 {offsets = [0, 32], sizes = [2, 32], strides = [1, 1]} : vector<2x64xf32> to vector<2x32xf32>
    %129 = vector.extract_strided_slice %118 {offsets = [0, 64], sizes = [2, 32], strides = [1, 1]} : vector<2x96xf32> to vector<2x32xf32>
    %130 = vector.extract_strided_slice %95 {offsets = [0, 64], sizes = [2, 32], strides = [1, 1]} : vector<2x96xf32> to vector<2x32xf32>
    %131 = arith.mulf %127, %130 : vector<2x32xf32>
    %132 = arith.addf %129, %131 : vector<2x32xf32>
    %133 = math.tanh %132 : vector<2x32xf32>
    %134 = arith.subf %89, %133 : vector<2x32xf32>
    %135 = arith.mulf %128, %134 : vector<2x32xf32>
    %136 = arith.addf %133, %135 : vector<2x32xf32>
    %137 = arith.truncf %136 : vector<2x32xf32> to vector<2x32xbf16>
    %cst_26 = arith.constant dense<0.000000e+00> : vector<2x192xf32>
    %138 = tpu.matmul %137, %1, %cst_26 {dimension_numbers = #tpu.dot_dimension_numbers<[1], [0], [0], [1], [0, 0, 1, 1], [], []>} : vector<2x32xbf16>, vector<32x192xbf16>, vector<2x192xf32> -> vector<2x192xf32>
    %139 = vector.broadcast %6 : vector<1x192xf32> to vector<2x192xf32>
    %140 = arith.addf %138, %139 : vector<2x192xf32>
    %141 = vector.extract_strided_slice %140 {offsets = [0, 0], sizes = [2, 96], strides = [1, 1]} : vector<2x192xf32> to vector<2x96xf32>
    %142 = vector.extract_strided_slice %140 {offsets = [0, 96], sizes = [2, 96], strides = [1, 1]} : vector<2x192xf32> to vector<2x96xf32>
    %143 = vector.extract_strided_slice %141 {offsets = [0, 0], sizes = [2, 64], strides = [1, 1]} : vector<2x96xf32> to vector<2x64xf32>
    %144 = vector.extract_strided_slice %117 {offsets = [0, 0], sizes = [2, 64], strides = [1, 1]} : vector<2x96xf32> to vector<2x64xf32>
    %145 = arith.addf %143, %144 : vector<2x64xf32>
    %146 = arith.negf %145 : vector<2x64xf32>
    %147 = math.exp %146 : vector<2x64xf32>
    %cst_27 = arith.constant 1.000000e+00 : f32
    %148 = vector.broadcast %cst_27 : f32 to vector<2x64xf32>
    %149 = arith.addf %148, %147 : vector<2x64xf32>
    %150 = arith.divf %148, %149 : vector<2x64xf32>
    %151 = vector.extract_strided_slice %150 {offsets = [0, 0], sizes = [2, 32], strides = [1, 1]} : vector<2x64xf32> to vector<2x32xf32>
    %152 = vector.extract_strided_slice %150 {offsets = [0, 32], sizes = [2, 32], strides = [1, 1]} : vector<2x64xf32> to vector<2x32xf32>
    %153 = vector.extract_strided_slice %141 {offsets = [0, 64], sizes = [2, 32], strides = [1, 1]} : vector<2x96xf32> to vector<2x32xf32>
    %154 = vector.extract_strided_slice %117 {offsets = [0, 64], sizes = [2, 32], strides = [1, 1]} : vector<2x96xf32> to vector<2x32xf32>
    %155 = arith.mulf %151, %154 : vector<2x32xf32>
    %156 = arith.addf %153, %155 : vector<2x32xf32>
    %157 = math.tanh %156 : vector<2x32xf32>
    %158 = arith.subf %113, %157 : vector<2x32xf32>
    %159 = arith.mulf %152, %158 : vector<2x32xf32>
    %160 = arith.addf %157, %159 : vector<2x32xf32>
    %161 = arith.truncf %160 : vector<2x32xf32> to vector<2x32xbf16>
    %cst_28 = arith.constant dense<0.000000e+00> : vector<2x96xf32>
    %162 = tpu.matmul %161, %2, %cst_28 {dimension_numbers = #tpu.dot_dimension_numbers<[1], [0], [0], [1], [0, 0, 1, 1], [], []>} : vector<2x32xbf16>, vector<32x96xbf16>, vector<2x96xf32> -> vector<2x96xf32>
    %163 = vector.broadcast %7 : vector<1x96xf32> to vector<2x96xf32>
    %164 = arith.addf %162, %163 : vector<2x96xf32>
    %165 = vector.extract_strided_slice %14 {offsets = [6, 0], sizes = [2, 96], strides = [1, 1]} : vector<16x96xf32> to vector<2x96xf32>
    %166 = vector.extract_strided_slice %165 {offsets = [0, 0], sizes = [2, 64], strides = [1, 1]} : vector<2x96xf32> to vector<2x64xf32>
    %167 = vector.extract_strided_slice %142 {offsets = [0, 0], sizes = [2, 64], strides = [1, 1]} : vector<2x96xf32> to vector<2x64xf32>
    %168 = arith.addf %166, %167 : vector<2x64xf32>
    %169 = arith.negf %168 : vector<2x64xf32>
    %170 = math.exp %169 : vector<2x64xf32>
    %cst_29 = arith.constant 1.000000e+00 : f32
    %171 = vector.broadcast %cst_29 : f32 to vector<2x64xf32>
    %172 = arith.addf %171, %170 : vector<2x64xf32>
    %173 = arith.divf %171, %172 : vector<2x64xf32>
    %174 = vector.extract_strided_slice %173 {offsets = [0, 0], sizes = [2, 32], strides = [1, 1]} : vector<2x64xf32> to vector<2x32xf32>
    %175 = vector.extract_strided_slice %173 {offsets = [0, 32], sizes = [2, 32], strides = [1, 1]} : vector<2x64xf32> to vector<2x32xf32>
    %176 = vector.extract_strided_slice %165 {offsets = [0, 64], sizes = [2, 32], strides = [1, 1]} : vector<2x96xf32> to vector<2x32xf32>
    %177 = vector.extract_strided_slice %142 {offsets = [0, 64], sizes = [2, 32], strides = [1, 1]} : vector<2x96xf32> to vector<2x32xf32>
    %178 = arith.mulf %174, %177 : vector<2x32xf32>
    %179 = arith.addf %176, %178 : vector<2x32xf32>
    %180 = math.tanh %179 : vector<2x32xf32>
    %181 = arith.subf %136, %180 : vector<2x32xf32>
    %182 = arith.mulf %175, %181 : vector<2x32xf32>
    %183 = arith.addf %180, %182 : vector<2x32xf32>
    %184 = arith.truncf %183 : vector<2x32xf32> to vector<2x32xbf16>
    %cst_30 = arith.constant dense<0.000000e+00> : vector<2x192xf32>
    %185 = tpu.matmul %184, %1, %cst_30 {dimension_numbers = #tpu.dot_dimension_numbers<[1], [0], [0], [1], [0, 0, 1, 1], [], []>} : vector<2x32xbf16>, vector<32x192xbf16>, vector<2x192xf32> -> vector<2x192xf32>
    %186 = vector.broadcast %6 : vector<1x192xf32> to vector<2x192xf32>
    %187 = arith.addf %185, %186 : vector<2x192xf32>
    %188 = vector.extract_strided_slice %187 {offsets = [0, 0], sizes = [2, 96], strides = [1, 1]} : vector<2x192xf32> to vector<2x96xf32>
    %189 = vector.extract_strided_slice %187 {offsets = [0, 96], sizes = [2, 96], strides = [1, 1]} : vector<2x192xf32> to vector<2x96xf32>
    %190 = vector.extract_strided_slice %188 {offsets = [0, 0], sizes = [2, 64], strides = [1, 1]} : vector<2x96xf32> to vector<2x64xf32>
    %191 = vector.extract_strided_slice %164 {offsets = [0, 0], sizes = [2, 64], strides = [1, 1]} : vector<2x96xf32> to vector<2x64xf32>
    %192 = arith.addf %190, %191 : vector<2x64xf32>
    %193 = arith.negf %192 : vector<2x64xf32>
    %194 = math.exp %193 : vector<2x64xf32>
    %cst_31 = arith.constant 1.000000e+00 : f32
    %195 = vector.broadcast %cst_31 : f32 to vector<2x64xf32>
    %196 = arith.addf %195, %194 : vector<2x64xf32>
    %197 = arith.divf %195, %196 : vector<2x64xf32>
    %198 = vector.extract_strided_slice %197 {offsets = [0, 0], sizes = [2, 32], strides = [1, 1]} : vector<2x64xf32> to vector<2x32xf32>
    %199 = vector.extract_strided_slice %197 {offsets = [0, 32], sizes = [2, 32], strides = [1, 1]} : vector<2x64xf32> to vector<2x32xf32>
    %200 = vector.extract_strided_slice %188 {offsets = [0, 64], sizes = [2, 32], strides = [1, 1]} : vector<2x96xf32> to vector<2x32xf32>
    %201 = vector.extract_strided_slice %164 {offsets = [0, 64], sizes = [2, 32], strides = [1, 1]} : vector<2x96xf32> to vector<2x32xf32>
    %202 = arith.mulf %198, %201 : vector<2x32xf32>
    %203 = arith.addf %200, %202 : vector<2x32xf32>
    %204 = math.tanh %203 : vector<2x32xf32>
    %205 = arith.subf %160, %204 : vector<2x32xf32>
    %206 = arith.mulf %199, %205 : vector<2x32xf32>
    %207 = arith.addf %204, %206 : vector<2x32xf32>
    %208 = arith.truncf %207 : vector<2x32xf32> to vector<2x32xbf16>
    %cst_32 = arith.constant dense<0.000000e+00> : vector<2x96xf32>
    %209 = tpu.matmul %208, %2, %cst_32 {dimension_numbers = #tpu.dot_dimension_numbers<[1], [0], [0], [1], [0, 0, 1, 1], [], []>} : vector<2x32xbf16>, vector<32x96xbf16>, vector<2x96xf32> -> vector<2x96xf32>
    %210 = vector.broadcast %7 : vector<1x96xf32> to vector<2x96xf32>
    %211 = arith.addf %209, %210 : vector<2x96xf32>
    %212 = vector.extract_strided_slice %14 {offsets = [8, 0], sizes = [2, 96], strides = [1, 1]} : vector<16x96xf32> to vector<2x96xf32>
    %213 = vector.extract_strided_slice %212 {offsets = [0, 0], sizes = [2, 64], strides = [1, 1]} : vector<2x96xf32> to vector<2x64xf32>
    %214 = vector.extract_strided_slice %189 {offsets = [0, 0], sizes = [2, 64], strides = [1, 1]} : vector<2x96xf32> to vector<2x64xf32>
    %215 = arith.addf %213, %214 : vector<2x64xf32>
    %216 = arith.negf %215 : vector<2x64xf32>
    %217 = math.exp %216 : vector<2x64xf32>
    %cst_33 = arith.constant 1.000000e+00 : f32
    %218 = vector.broadcast %cst_33 : f32 to vector<2x64xf32>
    %219 = arith.addf %218, %217 : vector<2x64xf32>
    %220 = arith.divf %218, %219 : vector<2x64xf32>
    %221 = vector.extract_strided_slice %220 {offsets = [0, 0], sizes = [2, 32], strides = [1, 1]} : vector<2x64xf32> to vector<2x32xf32>
    %222 = vector.extract_strided_slice %220 {offsets = [0, 32], sizes = [2, 32], strides = [1, 1]} : vector<2x64xf32> to vector<2x32xf32>
    %223 = vector.extract_strided_slice %212 {offsets = [0, 64], sizes = [2, 32], strides = [1, 1]} : vector<2x96xf32> to vector<2x32xf32>
    %224 = vector.extract_strided_slice %189 {offsets = [0, 64], sizes = [2, 32], strides = [1, 1]} : vector<2x96xf32> to vector<2x32xf32>
    %225 = arith.mulf %221, %224 : vector<2x32xf32>
    %226 = arith.addf %223, %225 : vector<2x32xf32>
    %227 = math.tanh %226 : vector<2x32xf32>
    %228 = arith.subf %183, %227 : vector<2x32xf32>
    %229 = arith.mulf %222, %228 : vector<2x32xf32>
    %230 = arith.addf %227, %229 : vector<2x32xf32>
    %231 = arith.truncf %230 : vector<2x32xf32> to vector<2x32xbf16>
    %cst_34 = arith.constant dense<0.000000e+00> : vector<2x192xf32>
    %232 = tpu.matmul %231, %1, %cst_34 {dimension_numbers = #tpu.dot_dimension_numbers<[1], [0], [0], [1], [0, 0, 1, 1], [], []>} : vector<2x32xbf16>, vector<32x192xbf16>, vector<2x192xf32> -> vector<2x192xf32>
    %233 = vector.broadcast %6 : vector<1x192xf32> to vector<2x192xf32>
    %234 = arith.addf %232, %233 : vector<2x192xf32>
    %235 = vector.extract_strided_slice %234 {offsets = [0, 0], sizes = [2, 96], strides = [1, 1]} : vector<2x192xf32> to vector<2x96xf32>
    %236 = vector.extract_strided_slice %234 {offsets = [0, 96], sizes = [2, 96], strides = [1, 1]} : vector<2x192xf32> to vector<2x96xf32>
    %237 = vector.extract_strided_slice %235 {offsets = [0, 0], sizes = [2, 64], strides = [1, 1]} : vector<2x96xf32> to vector<2x64xf32>
    %238 = vector.extract_strided_slice %211 {offsets = [0, 0], sizes = [2, 64], strides = [1, 1]} : vector<2x96xf32> to vector<2x64xf32>
    %239 = arith.addf %237, %238 : vector<2x64xf32>
    %240 = arith.negf %239 : vector<2x64xf32>
    %241 = math.exp %240 : vector<2x64xf32>
    %cst_35 = arith.constant 1.000000e+00 : f32
    %242 = vector.broadcast %cst_35 : f32 to vector<2x64xf32>
    %243 = arith.addf %242, %241 : vector<2x64xf32>
    %244 = arith.divf %242, %243 : vector<2x64xf32>
    %245 = vector.extract_strided_slice %244 {offsets = [0, 0], sizes = [2, 32], strides = [1, 1]} : vector<2x64xf32> to vector<2x32xf32>
    %246 = vector.extract_strided_slice %244 {offsets = [0, 32], sizes = [2, 32], strides = [1, 1]} : vector<2x64xf32> to vector<2x32xf32>
    %247 = vector.extract_strided_slice %235 {offsets = [0, 64], sizes = [2, 32], strides = [1, 1]} : vector<2x96xf32> to vector<2x32xf32>
    %248 = vector.extract_strided_slice %211 {offsets = [0, 64], sizes = [2, 32], strides = [1, 1]} : vector<2x96xf32> to vector<2x32xf32>
    %249 = arith.mulf %245, %248 : vector<2x32xf32>
    %250 = arith.addf %247, %249 : vector<2x32xf32>
    %251 = math.tanh %250 : vector<2x32xf32>
    %252 = arith.subf %207, %251 : vector<2x32xf32>
    %253 = arith.mulf %246, %252 : vector<2x32xf32>
    %254 = arith.addf %251, %253 : vector<2x32xf32>
    %255 = arith.truncf %254 : vector<2x32xf32> to vector<2x32xbf16>
    %cst_36 = arith.constant dense<0.000000e+00> : vector<2x96xf32>
    %256 = tpu.matmul %255, %2, %cst_36 {dimension_numbers = #tpu.dot_dimension_numbers<[1], [0], [0], [1], [0, 0, 1, 1], [], []>} : vector<2x32xbf16>, vector<32x96xbf16>, vector<2x96xf32> -> vector<2x96xf32>
    %257 = vector.broadcast %7 : vector<1x96xf32> to vector<2x96xf32>
    %258 = arith.addf %256, %257 : vector<2x96xf32>
    %259 = vector.extract_strided_slice %14 {offsets = [10, 0], sizes = [2, 96], strides = [1, 1]} : vector<16x96xf32> to vector<2x96xf32>
    %260 = vector.extract_strided_slice %259 {offsets = [0, 0], sizes = [2, 64], strides = [1, 1]} : vector<2x96xf32> to vector<2x64xf32>
    %261 = vector.extract_strided_slice %236 {offsets = [0, 0], sizes = [2, 64], strides = [1, 1]} : vector<2x96xf32> to vector<2x64xf32>
    %262 = arith.addf %260, %261 : vector<2x64xf32>
    %263 = arith.negf %262 : vector<2x64xf32>
    %264 = math.exp %263 : vector<2x64xf32>
    %cst_37 = arith.constant 1.000000e+00 : f32
    %265 = vector.broadcast %cst_37 : f32 to vector<2x64xf32>
    %266 = arith.addf %265, %264 : vector<2x64xf32>
    %267 = arith.divf %265, %266 : vector<2x64xf32>
    %268 = vector.extract_strided_slice %267 {offsets = [0, 0], sizes = [2, 32], strides = [1, 1]} : vector<2x64xf32> to vector<2x32xf32>
    %269 = vector.extract_strided_slice %267 {offsets = [0, 32], sizes = [2, 32], strides = [1, 1]} : vector<2x64xf32> to vector<2x32xf32>
    %270 = vector.extract_strided_slice %259 {offsets = [0, 64], sizes = [2, 32], strides = [1, 1]} : vector<2x96xf32> to vector<2x32xf32>
    %271 = vector.extract_strided_slice %236 {offsets = [0, 64], sizes = [2, 32], strides = [1, 1]} : vector<2x96xf32> to vector<2x32xf32>
    %272 = arith.mulf %268, %271 : vector<2x32xf32>
    %273 = arith.addf %270, %272 : vector<2x32xf32>
    %274 = math.tanh %273 : vector<2x32xf32>
    %275 = arith.subf %230, %274 : vector<2x32xf32>
    %276 = arith.mulf %269, %275 : vector<2x32xf32>
    %277 = arith.addf %274, %276 : vector<2x32xf32>
    %278 = arith.truncf %277 : vector<2x32xf32> to vector<2x32xbf16>
    %cst_38 = arith.constant dense<0.000000e+00> : vector<2x192xf32>
    %279 = tpu.matmul %278, %1, %cst_38 {dimension_numbers = #tpu.dot_dimension_numbers<[1], [0], [0], [1], [0, 0, 1, 1], [], []>} : vector<2x32xbf16>, vector<32x192xbf16>, vector<2x192xf32> -> vector<2x192xf32>
    %280 = vector.broadcast %6 : vector<1x192xf32> to vector<2x192xf32>
    %281 = arith.addf %279, %280 : vector<2x192xf32>
    %282 = vector.extract_strided_slice %281 {offsets = [0, 0], sizes = [2, 96], strides = [1, 1]} : vector<2x192xf32> to vector<2x96xf32>
    %283 = vector.extract_strided_slice %281 {offsets = [0, 96], sizes = [2, 96], strides = [1, 1]} : vector<2x192xf32> to vector<2x96xf32>
    %284 = vector.extract_strided_slice %282 {offsets = [0, 0], sizes = [2, 64], strides = [1, 1]} : vector<2x96xf32> to vector<2x64xf32>
    %285 = vector.extract_strided_slice %258 {offsets = [0, 0], sizes = [2, 64], strides = [1, 1]} : vector<2x96xf32> to vector<2x64xf32>
    %286 = arith.addf %284, %285 : vector<2x64xf32>
    %287 = arith.negf %286 : vector<2x64xf32>
    %288 = math.exp %287 : vector<2x64xf32>
    %cst_39 = arith.constant 1.000000e+00 : f32
    %289 = vector.broadcast %cst_39 : f32 to vector<2x64xf32>
    %290 = arith.addf %289, %288 : vector<2x64xf32>
    %291 = arith.divf %289, %290 : vector<2x64xf32>
    %292 = vector.extract_strided_slice %291 {offsets = [0, 0], sizes = [2, 32], strides = [1, 1]} : vector<2x64xf32> to vector<2x32xf32>
    %293 = vector.extract_strided_slice %291 {offsets = [0, 32], sizes = [2, 32], strides = [1, 1]} : vector<2x64xf32> to vector<2x32xf32>
    %294 = vector.extract_strided_slice %282 {offsets = [0, 64], sizes = [2, 32], strides = [1, 1]} : vector<2x96xf32> to vector<2x32xf32>
    %295 = vector.extract_strided_slice %258 {offsets = [0, 64], sizes = [2, 32], strides = [1, 1]} : vector<2x96xf32> to vector<2x32xf32>
    %296 = arith.mulf %292, %295 : vector<2x32xf32>
    %297 = arith.addf %294, %296 : vector<2x32xf32>
    %298 = math.tanh %297 : vector<2x32xf32>
    %299 = arith.subf %254, %298 : vector<2x32xf32>
    %300 = arith.mulf %293, %299 : vector<2x32xf32>
    %301 = arith.addf %298, %300 : vector<2x32xf32>
    %302 = arith.truncf %301 : vector<2x32xf32> to vector<2x32xbf16>
    %cst_40 = arith.constant dense<0.000000e+00> : vector<2x96xf32>
    %303 = tpu.matmul %302, %2, %cst_40 {dimension_numbers = #tpu.dot_dimension_numbers<[1], [0], [0], [1], [0, 0, 1, 1], [], []>} : vector<2x32xbf16>, vector<32x96xbf16>, vector<2x96xf32> -> vector<2x96xf32>
    %304 = vector.broadcast %7 : vector<1x96xf32> to vector<2x96xf32>
    %305 = arith.addf %303, %304 : vector<2x96xf32>
    %306 = vector.extract_strided_slice %14 {offsets = [12, 0], sizes = [2, 96], strides = [1, 1]} : vector<16x96xf32> to vector<2x96xf32>
    %307 = vector.extract_strided_slice %306 {offsets = [0, 0], sizes = [2, 64], strides = [1, 1]} : vector<2x96xf32> to vector<2x64xf32>
    %308 = vector.extract_strided_slice %283 {offsets = [0, 0], sizes = [2, 64], strides = [1, 1]} : vector<2x96xf32> to vector<2x64xf32>
    %309 = arith.addf %307, %308 : vector<2x64xf32>
    %310 = arith.negf %309 : vector<2x64xf32>
    %311 = math.exp %310 : vector<2x64xf32>
    %cst_41 = arith.constant 1.000000e+00 : f32
    %312 = vector.broadcast %cst_41 : f32 to vector<2x64xf32>
    %313 = arith.addf %312, %311 : vector<2x64xf32>
    %314 = arith.divf %312, %313 : vector<2x64xf32>
    %315 = vector.extract_strided_slice %314 {offsets = [0, 0], sizes = [2, 32], strides = [1, 1]} : vector<2x64xf32> to vector<2x32xf32>
    %316 = vector.extract_strided_slice %314 {offsets = [0, 32], sizes = [2, 32], strides = [1, 1]} : vector<2x64xf32> to vector<2x32xf32>
    %317 = vector.extract_strided_slice %306 {offsets = [0, 64], sizes = [2, 32], strides = [1, 1]} : vector<2x96xf32> to vector<2x32xf32>
    %318 = vector.extract_strided_slice %283 {offsets = [0, 64], sizes = [2, 32], strides = [1, 1]} : vector<2x96xf32> to vector<2x32xf32>
    %319 = arith.mulf %315, %318 : vector<2x32xf32>
    %320 = arith.addf %317, %319 : vector<2x32xf32>
    %321 = math.tanh %320 : vector<2x32xf32>
    %322 = arith.subf %277, %321 : vector<2x32xf32>
    %323 = arith.mulf %316, %322 : vector<2x32xf32>
    %324 = arith.addf %321, %323 : vector<2x32xf32>
    %325 = arith.truncf %324 : vector<2x32xf32> to vector<2x32xbf16>
    %cst_42 = arith.constant dense<0.000000e+00> : vector<2x192xf32>
    %326 = tpu.matmul %325, %1, %cst_42 {dimension_numbers = #tpu.dot_dimension_numbers<[1], [0], [0], [1], [0, 0, 1, 1], [], []>} : vector<2x32xbf16>, vector<32x192xbf16>, vector<2x192xf32> -> vector<2x192xf32>
    %327 = vector.broadcast %6 : vector<1x192xf32> to vector<2x192xf32>
    %328 = arith.addf %326, %327 : vector<2x192xf32>
    %329 = vector.extract_strided_slice %328 {offsets = [0, 0], sizes = [2, 96], strides = [1, 1]} : vector<2x192xf32> to vector<2x96xf32>
    %330 = vector.extract_strided_slice %328 {offsets = [0, 96], sizes = [2, 96], strides = [1, 1]} : vector<2x192xf32> to vector<2x96xf32>
    %331 = vector.extract_strided_slice %329 {offsets = [0, 0], sizes = [2, 64], strides = [1, 1]} : vector<2x96xf32> to vector<2x64xf32>
    %332 = vector.extract_strided_slice %305 {offsets = [0, 0], sizes = [2, 64], strides = [1, 1]} : vector<2x96xf32> to vector<2x64xf32>
    %333 = arith.addf %331, %332 : vector<2x64xf32>
    %334 = arith.negf %333 : vector<2x64xf32>
    %335 = math.exp %334 : vector<2x64xf32>
    %cst_43 = arith.constant 1.000000e+00 : f32
    %336 = vector.broadcast %cst_43 : f32 to vector<2x64xf32>
    %337 = arith.addf %336, %335 : vector<2x64xf32>
    %338 = arith.divf %336, %337 : vector<2x64xf32>
    %339 = vector.extract_strided_slice %338 {offsets = [0, 0], sizes = [2, 32], strides = [1, 1]} : vector<2x64xf32> to vector<2x32xf32>
    %340 = vector.extract_strided_slice %338 {offsets = [0, 32], sizes = [2, 32], strides = [1, 1]} : vector<2x64xf32> to vector<2x32xf32>
    %341 = vector.extract_strided_slice %329 {offsets = [0, 64], sizes = [2, 32], strides = [1, 1]} : vector<2x96xf32> to vector<2x32xf32>
    %342 = vector.extract_strided_slice %305 {offsets = [0, 64], sizes = [2, 32], strides = [1, 1]} : vector<2x96xf32> to vector<2x32xf32>
    %343 = arith.mulf %339, %342 : vector<2x32xf32>
    %344 = arith.addf %341, %343 : vector<2x32xf32>
    %345 = math.tanh %344 : vector<2x32xf32>
    %346 = arith.subf %301, %345 : vector<2x32xf32>
    %347 = arith.mulf %340, %346 : vector<2x32xf32>
    %348 = arith.addf %345, %347 : vector<2x32xf32>
    %349 = arith.truncf %348 : vector<2x32xf32> to vector<2x32xbf16>
    %cst_44 = arith.constant dense<0.000000e+00> : vector<2x96xf32>
    %350 = tpu.matmul %349, %2, %cst_44 {dimension_numbers = #tpu.dot_dimension_numbers<[1], [0], [0], [1], [0, 0, 1, 1], [], []>} : vector<2x32xbf16>, vector<32x96xbf16>, vector<2x96xf32> -> vector<2x96xf32>
    %351 = vector.broadcast %7 : vector<1x96xf32> to vector<2x96xf32>
    %352 = arith.addf %350, %351 : vector<2x96xf32>
    %353 = vector.extract_strided_slice %14 {offsets = [14, 0], sizes = [2, 96], strides = [1, 1]} : vector<16x96xf32> to vector<2x96xf32>
    %354 = vector.extract_strided_slice %353 {offsets = [0, 0], sizes = [2, 64], strides = [1, 1]} : vector<2x96xf32> to vector<2x64xf32>
    %355 = vector.extract_strided_slice %330 {offsets = [0, 0], sizes = [2, 64], strides = [1, 1]} : vector<2x96xf32> to vector<2x64xf32>
    %356 = arith.addf %354, %355 : vector<2x64xf32>
    %357 = arith.negf %356 : vector<2x64xf32>
    %358 = math.exp %357 : vector<2x64xf32>
    %cst_45 = arith.constant 1.000000e+00 : f32
    %359 = vector.broadcast %cst_45 : f32 to vector<2x64xf32>
    %360 = arith.addf %359, %358 : vector<2x64xf32>
    %361 = arith.divf %359, %360 : vector<2x64xf32>
    %362 = vector.extract_strided_slice %361 {offsets = [0, 0], sizes = [2, 32], strides = [1, 1]} : vector<2x64xf32> to vector<2x32xf32>
    %363 = vector.extract_strided_slice %361 {offsets = [0, 32], sizes = [2, 32], strides = [1, 1]} : vector<2x64xf32> to vector<2x32xf32>
    %364 = vector.extract_strided_slice %353 {offsets = [0, 64], sizes = [2, 32], strides = [1, 1]} : vector<2x96xf32> to vector<2x32xf32>
    %365 = vector.extract_strided_slice %330 {offsets = [0, 64], sizes = [2, 32], strides = [1, 1]} : vector<2x96xf32> to vector<2x32xf32>
    %366 = arith.mulf %362, %365 : vector<2x32xf32>
    %367 = arith.addf %364, %366 : vector<2x32xf32>
    %368 = math.tanh %367 : vector<2x32xf32>
    %369 = arith.subf %324, %368 : vector<2x32xf32>
    %370 = arith.mulf %363, %369 : vector<2x32xf32>
    %371 = arith.addf %368, %370 : vector<2x32xf32>
    %372 = arith.truncf %371 : vector<2x32xf32> to vector<2x32xbf16>
    %cst_46 = arith.constant dense<0.000000e+00> : vector<2x192xf32>
    %373 = tpu.matmul %372, %1, %cst_46 {dimension_numbers = #tpu.dot_dimension_numbers<[1], [0], [0], [1], [0, 0, 1, 1], [], []>} : vector<2x32xbf16>, vector<32x192xbf16>, vector<2x192xf32> -> vector<2x192xf32>
    %374 = vector.broadcast %6 : vector<1x192xf32> to vector<2x192xf32>
    %375 = arith.addf %373, %374 : vector<2x192xf32>
    %376 = vector.extract_strided_slice %375 {offsets = [0, 0], sizes = [2, 96], strides = [1, 1]} : vector<2x192xf32> to vector<2x96xf32>
    %377 = vector.extract_strided_slice %376 {offsets = [0, 0], sizes = [2, 64], strides = [1, 1]} : vector<2x96xf32> to vector<2x64xf32>
    %378 = vector.extract_strided_slice %352 {offsets = [0, 0], sizes = [2, 64], strides = [1, 1]} : vector<2x96xf32> to vector<2x64xf32>
    %379 = arith.addf %377, %378 : vector<2x64xf32>
    %380 = arith.negf %379 : vector<2x64xf32>
    %381 = math.exp %380 : vector<2x64xf32>
    %cst_47 = arith.constant 1.000000e+00 : f32
    %382 = vector.broadcast %cst_47 : f32 to vector<2x64xf32>
    %383 = arith.addf %382, %381 : vector<2x64xf32>
    %384 = arith.divf %382, %383 : vector<2x64xf32>
    %385 = vector.extract_strided_slice %384 {offsets = [0, 0], sizes = [2, 32], strides = [1, 1]} : vector<2x64xf32> to vector<2x32xf32>
    %386 = vector.extract_strided_slice %384 {offsets = [0, 32], sizes = [2, 32], strides = [1, 1]} : vector<2x64xf32> to vector<2x32xf32>
    %387 = vector.extract_strided_slice %376 {offsets = [0, 64], sizes = [2, 32], strides = [1, 1]} : vector<2x96xf32> to vector<2x32xf32>
    %388 = vector.extract_strided_slice %352 {offsets = [0, 64], sizes = [2, 32], strides = [1, 1]} : vector<2x96xf32> to vector<2x32xf32>
    %389 = arith.mulf %385, %388 : vector<2x32xf32>
    %390 = arith.addf %387, %389 : vector<2x32xf32>
    %391 = math.tanh %390 : vector<2x32xf32>
    %392 = arith.subf %348, %391 : vector<2x32xf32>
    %393 = arith.mulf %386, %392 : vector<2x32xf32>
    %394 = arith.addf %391, %393 : vector<2x32xf32>
    %395 = tpu.concatenate %371, %394 in 1 : vector<2x32xf32>, vector<2x32xf32> -> vector<2x64xf32>
    %396 = arith.truncf %395 : vector<2x64xf32> to vector<2x64xbf16>
    %cst_48 = arith.constant dense<0.000000e+00> : vector<2x32xf32>
    %397 = tpu.matmul %396, %3, %cst_48 {dimension_numbers = #tpu.dot_dimension_numbers<[1], [0], [0], [1], [0, 0, 1, 1], [], []>} : vector<2x64xbf16>, vector<64x32xbf16>, vector<2x32xf32> -> vector<2x32xf32>
    %398 = vector.broadcast %8 : vector<1x32xf32> to vector<2x32xf32>
    %399 = arith.addf %397, %398 : vector<2x32xf32>
    %cst_49 = arith.constant 0.000000e+00 : f32
    %400 = vector.broadcast %cst_49 : f32 to vector<2x32xf32>
    %401 = arith.maximumf %399, %400 : vector<2x32xf32>
    %402 = arith.truncf %401 : vector<2x32xf32> to vector<2x32xbf16>
    %cst_50 = arith.constant dense<0.000000e+00> : vector<2x5xf32>
    %403 = tpu.matmul %402, %4, %cst_50 {dimension_numbers = #tpu.dot_dimension_numbers<[1], [0], [0], [1], [0, 0, 1, 1], [], []>} : vector<2x32xbf16>, vector<32x5xbf16>, vector<2x5xf32> -> vector<2x5xf32>
    %404 = vector.broadcast %9 : vector<1x5xf32> to vector<2x5xf32>
    %405 = arith.addf %403, %404 : vector<2x5xf32>
    %cst_51 = arith.constant dense<0xFF800000> : vector<2xf32>
    %406 = vector.multi_reduction <maximumf>, %405, %cst_51 [1] : vector<2x5xf32> to vector<2xf32>
    %407 = vector.shape_cast %406 : vector<2xf32> to vector<2x1xf32>
    %408 = vector.broadcast %407 : vector<2x1xf32> to vector<2x5xf32>
    %409 = arith.subf %405, %408 : vector<2x5xf32>
    %410 = math.exp %409 : vector<2x5xf32>
    %cst_52 = arith.constant dense<0.000000e+00> : vector<2xf32>
    %411 = vector.multi_reduction <add>, %410, %cst_52 [1] : vector<2x5xf32> to vector<2xf32>
    %412 = vector.shape_cast %411 : vector<2xf32> to vector<2x1xf32>
    %413 = math.log %412 : vector<2x1xf32>
    %414 = arith.addf %407, %413 : vector<2x1xf32>
    %415 = vector.broadcast %414 : vector<2x1xf32> to vector<2x5xf32>
    %416 = arith.subf %405, %415 : vector<2x5xf32>
    %c0_53 = arith.constant 0 : index
    %c0_54 = arith.constant 0 : index
    %417 = vector.load %arg3[%c0_53, %c0_54] : memref<2x5xf32, #tpu.memory_space<vmem>>, vector<2x5xf32>
    tpu.vector_store %arg3[%c0_53, %c0_54], %416 {strides = array<i32>} : memref<2x5xf32, #tpu.memory_space<vmem>>, vector<2x5xf32>,
    return
  }
}

</mosaic_0001>

<bundles_post_ra>
// kernel: net_forward.1
= control target key start
LH: loop header
LB: loop body
LE: loop exit
PB: predicated region body
PF: predicated region fallthrough
CT: control target
= control target key end

     0   :  { %8 = vsyncpa [#allocation3], 0  ;;  %s2357_s0 = inlined_call_operand.vmem [shape: f32[16,16], index: 0, kind: input, shape index: {}]   ;;  %s2358_s1 = inlined_call_operand.hbm [shape: bf16[176,192], index: 1, kind: input, shape index: {}]   ;;  %s2359_s2 = inlined_call_operand.vmem [shape: f32[8,192], index: 2, kind: input, shape index: {}]   ;;  %s2360_s3 = inlined_call_operand.hbm [shape: f32[2,5], index: 3, kind: output, shape index: {}]  }
   0x1   :  { %9 = vsyncpa [#allocation4], 0  ;;  %s1940_s12 = smov [#allocation2]   ;;  %s1892_s16 = scalar_lea.hbm %s2358_s1, 2816 }
   0x2   :  { %s17_s13 = sshll.u32 %s1940_s12, 4  ;;  %p1893_p0 = scmp.ne.s32.totalorder %s2358_s1, %s1892_s16  ;;  %s18_s13 = int_to_ptr.vmem [resolvable:$true] %s17_s13 }
   0x3   :  { %p1896_p1 = scmp.lt.u32.totalorder %s1892_s16, %s2358_s1 }
   0x5   :  { %p1898_p2 = pnand %p1896_p1, %p1893_p0 }
   0x7   :  { %1901 = shalt.err (!%p1898_p2)
}
   0x8   :  { %s1902_s21 = scalar_lea.vmem %s18_s13, 2816  ;;  %p1907_p4 = scmp.lt.s32.totalorder %s18_s13, %s18_s13 }
   0x9   :  { %p1903_p3 = scmp.ne.s32.totalorder %s18_s13, %s1902_s21  ;;  %p1908_p5 = scmp.lt.s32.totalorder %s1902_s21, %s1902_s21 }
   0xb   :  { %p1909_p6 = por %p1908_p5, %p1907_p4 }
   0xd   :  { %p1910_p7 = pnand %p1909_p6, %p1903_p3 }
   0xf   :  { %1913 = shalt.err (!%p1910_p7)
}
  0x10   :  { %s1941_s22 = smov 128   ;;  %s1942_s23 = smov 8  }
  0x11   :  { %23 = dma.hbm_to_vmem [thread:$0]  %s2358_s1, 2816, %s18_s13, [#allocation3], %s1941_s22, %s1941_s22, %s1942_s23  }
  0x12   :  { %1936 = dma.done.wait [#allocation3], 2816  }
  0x13   :  { %1937 = vsyncadd [#allocation3], 4294964480  ;;  %v113_v0 = vlaneseq  ;;  %v1943_v1 = vmov 0.0   ;;  %vm1944_vm0 = vmmov 0   ;;  %v1776_v5 = vld [vmem:[#allocation2] ss:$8 sps:$4 sm:$0xff]  }
  0x14   :  { %1684 = vmatprep.subr.bf16.mxu0 %v1943_v1  ;;  %1686 = vmatprep.mubr.msk.bf16.mxu0 %vm1944_vm0, %v1943_v1  ;;  %v58_v6 = vld [vmem:[%s2357_s0] sm:$0xff]  ;;  %v59_v7 = vld [vmem:[%s2357_s0 + $0x8] sm:$0xff]  ;;  %vm67_vm1 = vcmask 130048   ;;  %s1945_s4 = smov 32   ;;  %s1946_s5 = smov 96   ;;  %vm132_vm2 = vcmask 261120  }
  0x15   :  { %v114_v2 = vshrl.u32 %v113_v0, 7  ;;  %v1605_v8 = vld [vmem:[%s2359_s2 + $0x1] ss:$8 sm:$0x3]  ;;  %1685 = vmatpush3.bf16.msra.mxu0 %v1776_v5  ;;  %v60_v9 = vpack.c.bf16 %v59_v7, %v58_v6  ;;  %v52_v13 = vld [vmem:[%s2359_s2] ss:$0 sm:$0xff] }
  0x16   :  { %1690 = vmatprep.subr.bf16.mxu0 %v1943_v1  ;;  %s1947_s7 = smov 64   ;;  %v2019_v33 = vld [vmem:[#allocation2 + $0x14] ss:$8 sps:$4 sm:$0xff]   ;;  %v2021_v34 = vld [vmem:[#allocation2 + $0x10] ss:$8 sps:$4 sm:$0xff]   ;;  %v1948_v36 = vmov 0  }
  0x17   :  { %v115_v3 = vsub.s32 0, %v114_v2  ;;  %v119_v4 = vsub.s32 1, %v114_v2  ;;  %v2023_v35 = vld [vmem:[#allocation2 + $0x24] ss:$8 sps:$4 sm:$0xff]   ;;  %190 = vmatprep.subr.bf16.mxu1 %v2019_v33  ;;  %222 = vmatprep.mubr.bf16.mxu1 %v1948_v36  ;;  %v2028_v37 = vld [vmem:[#allocation2 + $0x20] ss:$8 sps:$4 sm:$0xff]  }
  0x18   :  { %1687 = vmatmul.mubr.msk.bf16.vlgmr.msra.gmra.mrb[0].mxu0 %vm67_vm1, %v60_v9  ;;  %191 = vmatpush1.bf16.msra.mxu1 %v2021_v34  ;;  %v2054_v5 = vld [vmem:[%s2359_s2 + $0x2] ss:$0 sm:$0xff]  ;;  %vm1474_vm3 = vcmask 523264   ;;  %vm1575_vm4 = vcmask 33792  }
  0x19   :  { %v1994_v10 = vrot.slane %v1605_v8, %v115_v3  ;;  %v1996_v11 = vrot.slane %v1605_v8, %v119_v4  ;;  %1694 = vmatprep.mubr.msk.bf16.mxu0 %vm1944_vm0, %v1943_v1  ;;  %192 = vmatprep.subr.bf16.mxu1 %v2023_v35 }
  0x1b   :  { %128 = vrot.lane.b32.xlu0 %v1994_v10, %s1945_s4  ;;  %142 = vrot.lane.b32.xlu1 %v1996_v11, %s1946_s5 }
  0x1c   :  { %193 = vmatpush1.bf16.msra.mxu1 %v2028_v37 }
  0x1d   :  { %369 = vmatprep.subr.bf16.mxu1 %v2019_v33 }
  0x1f   :  { %130 = vrot.lane.b32.xlu0 %v1996_v11, %s1945_s4 }
  0x8d   :  { %v129_v12 = vpop.permute.xlu0 %128  ;;  %v143_v26 = vpop.permute.xlu1 %142 }
  0x91   :  { %v131_v14 = vpop.permute.xlu0 %130 }
  0x92   :  { %v133_v18 = vsel %vm132_vm2, %v129_v12, %v131_v14 }
  0xeb   :  { %v105_v15 = vpop.f32.mrb[0].mxu0 }
  0xec   :  { %v2010_v16 = vadd.f32 %v105_v15, %v52_v13  ;;  %v1688_v17 = vpop.f32.mrb[1].mxu0 }
  0xed   :  { %v108_v19 = vpop.f32.mrb[2].mxu0 }
  0xee   :  { %v2013_v20 = vadd.f32 %v108_v19, %v52_v13  ;;  %v1689_v21 = vpop.f32.mrb[3].mxu0  ;;  %v135_v22 = vadd.f32 %v133_v18, %v2010_v16 }
  0xf0   :  { %v1608_v23 = vmul.f32 -1.442695, %v135_v22 }
  0xf2   :  { %1791 = vpow2.f32 %v1608_v23 }
  0xfc   :  { %v1792_v24 = vpop.eup %1791 }
  0xfd   :  { %v139_v25 = vadd.f32 1.0, %v1792_v24 }
  0xff   :  { %1793 = vrcp.f32 %v139_v25 }
 0x109   :  { %v1794_v27 = vpop.eup %1793 }
 0x10a   :  { %v145_v28 = vmul.f32 %v1794_v27, %v143_v26 }
 0x10c   :  { %147 = vrot.lane.b32.xlu1 %v145_v28, %s1947_s7 }
 0x17e   :  { %v148_v29 = vpop.permute.xlu1 %147 }
 0x17f   :  { %v150_v30 = vadd.f32 %v148_v29, %v2010_v16 }
 0x181   :  { %1795 = vtanh.f32 %v150_v30  ;;  %v2074_v30 = vld [vmem:[#allocation2 + $0x30] ss:$8 sps:$4 sm:$0xff]  }
 0x182   :  { %1691 = vmatpush3.bf16.msra.mxu0 %v2074_v30 }
 0x183   :  { %1692 = vmatprep.subr.bf16.mxu0 %v1943_v1 }
 0x18b   :  { %v1796_v31 = vpop.eup %1795 }
 0x18c   :  { %v152_v32 = vsub.f32 0.0, %v1796_v31 }
 0x18e   :  { %154 = vrot.lane.b32.xlu0 %v152_v32, %s1946_s5 }
 0x200   :  { %v155_v38 = vpop.permute.xlu0 %154 }
 0x201   :  { %v157_v39 = vmul.f32 %v1794_v27, %v155_v38 }
 0x203   :  { %159 = vrot.lane.b32.xlu1 %v157_v39, %s1945_s4 }
 0x275   :  { %v160_v40 = vpop.permute.xlu1 %159 }
 0x276   :  { %v162_v41 = vadd.f32 %v1796_v31, %v160_v40  ;;  %v2077_v31 = vld [vmem:[#allocation2 + $0x40] ss:$8 sps:$4 sm:$0xff]  }
 0x277   :  { %1693 = vmatpush3.bf16.msra.mxu0 %v2077_v31 }
 0x278   :  { %v163_v42 = vpack.c.bf16 %v162_v41, %v162_v41  ;;  %1698 = vmatprep.subr.bf16.mxu0 %v1943_v1 }
 0x27a   :  { %165 = vrot.lane.b32.xlu0 %v163_v42, %s1947_s7 }
 0x2ec   :  { %v166_v43 = vpop.permute.xlu0 %165 }
 0x2ed   :  { %1613 = vmatmul.mubr.msk.bf16.vlgmr.msra.gmra.mrb[0].mxu1 %vm132_vm2, %v166_v43 }
 0x2ee   :  { %370 = vmatpush1.bf16.msra.mxu1 %v2021_v34  ;;  %401 = vmatprep.mubr.bf16.mxu1 %v1948_v36 }
 0x2ef   :  { %371 = vmatprep.subr.bf16.mxu1 %v2023_v35 }
 0x2f2   :  { %372 = vmatpush1.bf16.msra.mxu1 %v2028_v37 }
 0x2f3   :  { %536 = vmatprep.subr.bf16.mxu1 %v2019_v33 }
 0x3c0   :  { %v224_v44 = vpop.f32.mrb[0].mxu1 }
 0x3c1   :  { %v225_v45 = vadd.f32 %v224_v44, %v1994_v10  ;;  %v226_v46 = vpop.f32.mrb[1].mxu1 }
 0x3c2   :  { %v227_v47 = vadd.f32 %v226_v46, %v1996_v11  ;;  %v228_v48 = vpop.f32.mrb[2].mxu1 }
 0x3c3   :  { %v229_v49 = vpop.f32.mrb[3].mxu1  ;;  %v321_v50 = vrot.slane %v225_v45, 6  ;;  %v231_v6 = vadd.f32 %v225_v45, %v2054_v5 }
 0x3c4   :  { %v322_v51 = vrot.slane %v227_v47, 6 }
 0x3c5   :  { %323 = vrot.lane.b32.xlu1 %v321_v50, %s1945_s4  ;;  %v1614_v7 = vmul.f32 -1.442695, %v231_v6 }
 0x3c6   :  { %325 = vrot.lane.b32.xlu0 %v322_v51, %s1945_s4 }
 0x3c9   :  { %336 = vrot.lane.b32.xlu1 %v322_v51, %s1946_s5 }
 0x437   :  { %v324_v52 = vpop.permute.xlu1 %323 }
 0x438   :  { %v326_v53 = vpop.permute.xlu0 %325 }
 0x439   :  { %v327_v54 = vsel %vm132_vm2, %v324_v52, %v326_v53 }
 0x43a   :  { %v329_v55 = vadd.f32 %v327_v54, %v2010_v16 }
 0x43b   :  { %v337_v60 = vpop.permute.xlu1 %336 }
 0x43c   :  { %v1618_v56 = vmul.f32 -1.442695, %v329_v55 }
 0x43e   :  { %1797 = vpow2.f32 %v1618_v56 }
 0x448   :  { %v1798_v57 = vpop.eup %1797 }
 0x449   :  { %v333_v58 = vadd.f32 1.0, %v1798_v57 }
 0x44b   :  { %1799 = vrcp.f32 %v333_v58 }
 0x455   :  { %v1800_v59 = vpop.eup %1799 }
 0x456   :  { %v339_v61 = vmul.f32 %v1800_v59, %v337_v60 }
 0x458   :  { %341 = vrot.lane.b32.xlu0 %v339_v61, %s1947_s7 }
 0x4ca   :  { %v342_v62 = vpop.permute.xlu0 %341 }
 0x4cb   :  { %v344_v63 = vadd.f32 %v342_v62, %v2010_v16 }
 0x4cd   :  { %1801 = vtanh.f32 %v344_v63 }
 0x4ce   :  { %1803 = vpow2.f32 %v1614_v7 }
 0x4d7   :  { %v1802_v0 = vpop.eup %1801 }
 0x4d8   :  { %v347_v2 = vrot.slane %v1802_v0, 2  ;;  %v1804_v8 = vpop.eup %1803 }
 0x4d9   :  { %v235_v9 = vadd.f32 1.0, %v1804_v8 }
 0x4da   :  { %v349_v3 = vsub.f32 %v162_v41, %v347_v2 }
 0x4db   :  { %1805 = vrcp.f32 %v235_v9 }
 0x4dc   :  { %v351_v4 = vrot.slane %v349_v3, 6 }
 0x4de   :  { %352 = vrot.lane.b32.xlu1 %v351_v4, %s1946_s5 }
 0x4e2   :  { %239 = vrot.lane.b32.xlu1 %v2054_v5, %s1947_s7 }
 0x4e5   :  { %v1806_v14 = vpop.eup %1805 }
 0x550   :  { %v353_v12 = vpop.permute.xlu1 %352 }
 0x551   :  { %v355_v13 = vmul.f32 %v1800_v59, %v353_v12 }
 0x553   :  { %357 = vrot.lane.b32.xlu0 %v355_v13, %s1945_s4 }
 0x554   :  { %v240_v15 = vpop.permute.xlu1 %239 }
 0x555   :  { %v242_v17 = vmul.f32 %v1806_v14, %v240_v15 }
 0x557   :  { %244 = vrot.lane.b32.xlu0 %v242_v17, %s1947_s7 }
 0x5c5   :  { %v358_v18 = vpop.permute.xlu0 %357 }
 0x5c6   :  { %v2061_v19 = vadd.f32 %v1802_v0, %v358_v18 }
 0x5c8   :  { %v361_v21 = vpack.c.bf16 %v2061_v19, %v2061_v19 }
 0x5c9   :  { %v245_v22 = vpop.permute.xlu0 %244 }
 0x5ca   :  { %v363_v23 = vrot.slane %v361_v21, 1  ;;  %v247_v24 = vadd.f32 %v245_v22, %v225_v45 }
 0x5cc   :  { %1807 = vtanh.f32 %v247_v24  ;;  %364 = vrot.lane.b32.xlu1 %v363_v23, %s1947_s7 }
 0x5d6   :  { %v1808_v25 = vpop.eup %1807 }
 0x5d7   :  { %v249_v26 = vsub.f32 0.0, %v1808_v25 }
 0x5d9   :  { %251 = vrot.lane.b32.xlu0 %v249_v26, %s1946_s5 }
 0x63e   :  { %v365_v27 = vpop.permute.xlu1 %364 }
 0x63f   :  { %1619 = vmatmul.mubr.msk.bf16.vlgmr.msra.gmra.mrb[4].mxu1 %vm132_vm2, %v365_v27 }
 0x640   :  { %537 = vmatpush1.bf16.msra.mxu1 %v2021_v34  ;;  %568 = vmatprep.mubr.bf16.mxu1 %v1948_v36 }
 0x641   :  { %538 = vmatprep.subr.bf16.mxu1 %v2023_v35 }
 0x644   :  { %539 = vmatpush1.bf16.msra.mxu1 %v2028_v37 }
 0x645   :  { %703 = vmatprep.subr.bf16.mxu1 %v2019_v33 }
 0x64b   :  { %v252_v28 = vpop.permute.xlu0 %251 }
 0x64c   :  { %v254_v29 = vmul.f32 %v1806_v14, %v252_v28 }
 0x64e   :  { %256 = vrot.lane.b32.xlu1 %v254_v29, %s1945_s4 }
 0x6c0   :  { %v257_v32 = vpop.permute.xlu1 %256 }
 0x6c1   :  { %v2082_v38 = vadd.f32 %v1808_v25, %v257_v32 }
 0x6c3   :  { %v260_v39 = vpack.c.bf16 %v2082_v38, %v2082_v38 }
 0x6c5   :  { %262 = vrot.lane.b32.xlu0 %v260_v39, %s1947_s7 }
 0x712   :  { %v403_v40 = vpop.f32.mrb[4].mxu1 }
 0x713   :  { %v404_v41 = vadd.f32 %v403_v40, %v1994_v10  ;;  %v405_v42 = vpop.f32.mrb[5].mxu1 }
 0x714   :  { %v406_v43 = vadd.f32 %v405_v42, %v1996_v11  ;;  %v407_v44 = vpop.f32.mrb[6].mxu1 }
 0x715   :  { %v408_v45 = vpop.f32.mrb[7].mxu1  ;;  %v488_v46 = vrot.slane %v404_v41, 4 }
 0x716   :  { %v489_v47 = vrot.slane %v406_v43, 4 }
 0x717   :  { %490 = vrot.lane.b32.xlu1 %v488_v46, %s1945_s4 }
 0x718   :  { %492 = vrot.lane.b32.xlu0 %v489_v47, %s1945_s4 }
 0x71b   :  { %503 = vrot.lane.b32.xlu1 %v489_v47, %s1946_s5 }
 0x737   :  { %v263_v48 = vpop.permute.xlu0 %262 }
 0x738   :  { %1695 = vmatmul.mubr.msk.bf16.vlgmr.msra.gmra.mrb[4].mxu0 %vm132_vm2, %v263_v48 }
 0x739   :  { %1699 = vmatpush3.bf16.msra.mxu0 %v2074_v30  ;;  %1702 = vmatprep.mubr.msk.bf16.mxu0 %vm1944_vm0, %v1943_v1 }
 0x73a   :  { %1700 = vmatprep.subr.bf16.mxu0 %v1943_v1 }
 0x73d   :  { %1701 = vmatpush3.bf16.msra.mxu0 %v2077_v31 }
 0x73e   :  { %1706 = vmatprep.subr.bf16.mxu0 %v1943_v1 }
 0x789   :  { %v491_v49 = vpop.permute.xlu1 %490 }
 0x78a   :  { %v493_v50 = vpop.permute.xlu0 %492 }
 0x78b   :  { %v494_v51 = vsel %vm132_vm2, %v491_v49, %v493_v50 }
 0x78c   :  { %v496_v52 = vadd.f32 %v494_v51, %v2010_v16 }
 0x78d   :  { %v504_v57 = vpop.permute.xlu1 %503 }
 0x78e   :  { %v1622_v53 = vmul.f32 -1.442695, %v496_v52 }
 0x790   :  { %1809 = vpow2.f32 %v1622_v53 }
 0x79a   :  { %v1810_v54 = vpop.eup %1809 }
 0x79b   :  { %v500_v55 = vadd.f32 1.0, %v1810_v54 }
 0x79d   :  { %1811 = vrcp.f32 %v500_v55 }
 0x7a7   :  { %v1812_v56 = vpop.eup %1811 }
 0x7a8   :  { %v506_v58 = vmul.f32 %v1812_v56, %v504_v57 }
 0x7aa   :  { %508 = vrot.lane.b32.xlu0 %v506_v58, %s1947_s7 }
 0x80b   :  { %v313_v59 = vpop.f32.mrb[4].mxu0 }
 0x80c   :  { %v314_v60 = vadd.f32 %v313_v59, %v2054_v5  ;;  %v1696_v61 = vpop.f32.mrb[5].mxu0 }
 0x80d   :  { %v316_v62 = vpop.f32.mrb[6].mxu0 }
 0x80e   :  { %418 = vrot.lane.b32.xlu0 %v314_v60, %s1947_s7  ;;  %v1697_v63 = vpop.f32.mrb[7].mxu0  ;;  %v410_v8 = vadd.f32 %v404_v41, %v314_v60 }
 0x810   :  { %v1620_v9 = vmul.f32 -1.442695, %v410_v8 }
 0x81c   :  { %v509_v0 = vpop.permute.xlu0 %508 }
 0x81d   :  { %v511_v2 = vadd.f32 %v509_v0, %v2010_v16 }
 0x81f   :  { %1813 = vtanh.f32 %v511_v2 }
 0x820   :  { %1815 = vpow2.f32 %v1620_v9 }
 0x829   :  { %v1814_v3 = vpop.eup %1813 }
 0x82a   :  { %v514_v4 = vrot.slane %v1814_v3, 2  ;;  %v1816_v12 = vpop.eup %1815 }
 0x82b   :  { %v414_v13 = vadd.f32 1.0, %v1816_v12 }
 0x82c   :  { %v516_v6 = vsub.f32 %v2061_v19, %v514_v4 }
 0x82d   :  { %1817 = vrcp.f32 %v414_v13 }
 0x82e   :  { %v518_v7 = vrot.slane %v516_v6, 6 }
 0x830   :  { %519 = vrot.lane.b32.xlu1 %v518_v7, %s1946_s5 }
 0x837   :  { %v1818_v14 = vpop.eup %1817 }
 0x880   :  { %v419_v15 = vpop.permute.xlu0 %418 }
 0x881   :  { %v421_v17 = vmul.f32 %v1818_v14, %v419_v15 }
 0x883   :  { %423 = vrot.lane.b32.xlu0 %v421_v17, %s1947_s7 }
 0x8a2   :  { %v520_v18 = vpop.permute.xlu1 %519 }
 0x8a3   :  { %v522_v21 = vmul.f32 %v1812_v56, %v520_v18 }
 0x8a5   :  { %524 = vrot.lane.b32.xlu1 %v522_v21, %s1945_s4 }
 0x8f5   :  { %v424_v22 = vpop.permute.xlu0 %423 }
 0x8f6   :  { %v426_v19 = vadd.f32 %v424_v22, %v404_v41 }
 0x8f8   :  { %1819 = vtanh.f32 %v426_v19 }
 0x902   :  { %v1820_v23 = vpop.eup %1819 }
 0x903   :  { %v428_v24 = vsub.f32 %v2082_v38, %v1820_v23 }
 0x905   :  { %430 = vrot.lane.b32.xlu0 %v428_v24, %s1946_s5 }
 0x917   :  { %v525_v25 = vpop.permute.xlu1 %524 }
 0x918   :  { %v527_v26 = vadd.f32 %v1814_v3, %v525_v25 }
 0x91a   :  { %v528_v27 = vpack.c.bf16 %v527_v26, %v527_v26 }
 0x91c   :  { %v530_v28 = vrot.slane %v528_v27, 2 }
 0x91e   :  { %531 = vrot.lane.b32.xlu1 %v530_v28, %s1947_s7 }
 0x977   :  { %v431_v29 = vpop.permute.xlu0 %430 }
 0x978   :  { %v433_v32 = vmul.f32 %v1818_v14, %v431_v29 }
 0x97a   :  { %435 = vrot.lane.b32.xlu1 %v433_v32, %s1945_s4 }
 0x990   :  { %v532_v39 = vpop.permute.xlu1 %531 }
 0x991   :  { %1623 = vmatmul.mubr.msk.bf16.vlgmr.msra.gmra.mrb[8].mxu1 %vm132_vm2, %v532_v39 }
 0x992   :  { %704 = vmatpush1.bf16.msra.mxu1 %v2021_v34  ;;  %735 = vmatprep.mubr.bf16.mxu1 %v1948_v36 }
 0x993   :  { %705 = vmatprep.subr.bf16.mxu1 %v2023_v35 }
 0x996   :  { %706 = vmatpush1.bf16.msra.mxu1 %v2028_v37 }
 0x997   :  { %867 = vmatprep.subr.bf16.mxu1 %v2019_v33 }
 0x9ec   :  { %v436_v38 = vpop.permute.xlu1 %435 }
 0x9ed   :  { %v2119_v40 = vadd.f32 %v1820_v23, %v436_v38 }
 0x9ef   :  { %v439_v41 = vpack.c.bf16 %v2119_v40, %v2119_v40 }
 0x9f1   :  { %441 = vrot.lane.b32.xlu0 %v439_v41, %s1947_s7 }
 0xa63   :  { %v442_v42 = vpop.permute.xlu0 %441 }
 0xa64   :  { %1703 = vmatmul.mubr.msk.bf16.vlgmr.msra.gmra.mrb[8].mxu0 %vm132_vm2, %v442_v42  ;;  %v570_v43 = vpop.f32.mrb[8].mxu1 }
 0xa65   :  { %1707 = vmatpush3.bf16.msra.mxu0 %v2074_v30  ;;  %1710 = vmatprep.mubr.msk.bf16.mxu0 %vm1944_vm0, %v1943_v1  ;;  %v571_v44 = vadd.f32 %v570_v43, %v1994_v10  ;;  %v572_v45 = vpop.f32.mrb[9].mxu1 }
 0xa66   :  { %1708 = vmatprep.subr.bf16.mxu0 %v1943_v1  ;;  %v573_v46 = vadd.f32 %v572_v45, %v1996_v11  ;;  %v574_v47 = vpop.f32.mrb[10].mxu1 }
 0xa67   :  { %v575_v48 = vpop.f32.mrb[11].mxu1  ;;  %v655_v49 = vrot.slane %v571_v44, 2 }
 0xa68   :  { %v656_v50 = vrot.slane %v573_v46, 2 }
 0xa69   :  { %1709 = vmatpush3.bf16.msra.mxu0 %v2077_v31  ;;  %657 = vrot.lane.b32.xlu1 %v655_v49, %s1945_s4 }
 0xa6a   :  { %1714 = vmatprep.subr.bf16.mxu0 %v1943_v1  ;;  %659 = vrot.lane.b32.xlu0 %v656_v50, %s1945_s4 }
 0xa6d   :  { %670 = vrot.lane.b32.xlu1 %v656_v50, %s1946_s5 }
 0xadb   :  { %v658_v51 = vpop.permute.xlu1 %657 }
 0xadc   :  { %v660_v52 = vpop.permute.xlu0 %659 }
 0xadd   :  { %v661_v53 = vsel %vm132_vm2, %v658_v51, %v660_v52 }
 0xade   :  { %v663_v54 = vadd.f32 %v661_v53, %v2010_v16 }
 0xadf   :  { %v671_v59 = vpop.permute.xlu1 %670 }
 0xae0   :  { %v1626_v55 = vmul.f32 -1.442695, %v663_v54 }
 0xae2   :  { %1821 = vpow2.f32 %v1626_v55 }
 0xaec   :  { %v1822_v56 = vpop.eup %1821 }
 0xaed   :  { %v667_v57 = vadd.f32 1.0, %v1822_v56 }
 0xaef   :  { %1823 = vrcp.f32 %v667_v57 }
 0xaf9   :  { %v1824_v58 = vpop.eup %1823 }
 0xafa   :  { %v673_v60 = vmul.f32 %v1824_v58, %v671_v59 }
 0xafc   :  { %675 = vrot.lane.b32.xlu0 %v673_v60, %s1947_s7 }
 0xb37   :  { %v480_v61 = vpop.f32.mrb[8].mxu0 }
 0xb38   :  { %v481_v62 = vadd.f32 %v480_v61, %v2054_v5  ;;  %v1704_v63 = vpop.f32.mrb[9].mxu0 }
 0xb39   :  { %v483_v0 = vpop.f32.mrb[10].mxu0 }
 0xb3a   :  { %585 = vrot.lane.b32.xlu1 %v481_v62, %s1947_s7  ;;  %v1705_v2 = vpop.f32.mrb[11].mxu0  ;;  %v577_v12 = vadd.f32 %v571_v44, %v481_v62 }
 0xb3c   :  { %v1624_v13 = vmul.f32 -1.442695, %v577_v12 }
 0xb6e   :  { %v676_v3 = vpop.permute.xlu0 %675 }
 0xb6f   :  { %v678_v4 = vadd.f32 %v676_v3, %v2010_v16 }
 0xb71   :  { %1825 = vtanh.f32 %v678_v4 }
 0xb72   :  { %1827 = vpow2.f32 %v1624_v13 }
 0xb7b   :  { %v1826_v6 = vpop.eup %1825 }
 0xb7c   :  { %v681_v7 = vrot.slane %v1826_v6, 2  ;;  %v1828_v14 = vpop.eup %1827 }
 0xb7d   :  { %v581_v15 = vadd.f32 1.0, %v1828_v14 }
 0xb7e   :  { %v683_v8 = vsub.f32 %v527_v26, %v681_v7 }
 0xb7f   :  { %1829 = vrcp.f32 %v581_v15 }
 0xb80   :  { %v685_v9 = vrot.slane %v683_v8, 6 }
 0xb82   :  { %686 = vrot.lane.b32.xlu0 %v685_v9, %s1946_s5 }
 0xb89   :  { %v1830_v17 = vpop.eup %1829 }
 0xbac   :  { %v586_v18 = vpop.permute.xlu1 %585 }
 0xbad   :  { %v588_v21 = vmul.f32 %v1830_v17, %v586_v18 }
 0xbaf   :  { %590 = vrot.lane.b32.xlu1 %v588_v21, %s1947_s7 }
 0xbf4   :  { %v687_v22 = vpop.permute.xlu0 %686 }
 0xbf5   :  { %v689_v16 = vmul.f32 %v1824_v58, %v687_v22 }
 0xbf7   :  { %691 = vrot.lane.b32.xlu0 %v689_v16, %s1945_s4 }
 0xc21   :  { %v591_v19 = vpop.permute.xlu1 %590 }
 0xc22   :  { %v593_v23 = vadd.f32 %v591_v19, %v571_v44 }
 0xc24   :  { %1831 = vtanh.f32 %v593_v23 }
 0xc2e   :  { %v1832_v24 = vpop.eup %1831 }
 0xc2f   :  { %v595_v25 = vsub.f32 %v2119_v40, %v1832_v24 }
 0xc31   :  { %597 = vrot.lane.b32.xlu1 %v595_v25, %s1946_s5 }
 0xc69   :  { %v692_v26 = vpop.permute.xlu0 %691 }
 0xc6a   :  { %v2147_v27 = vadd.f32 %v1826_v6, %v692_v26 }
 0xc6c   :  { %v695_v28 = vpack.c.bf16 %v2147_v27, %v2147_v27 }
 0xc6e   :  { %v697_v29 = vrot.slane %v695_v28, 3 }
 0xc70   :  { %698 = vrot.lane.b32.xlu0 %v697_v29, %s1947_s7 }
 0xca3   :  { %v598_v32 = vpop.permute.xlu1 %597 }
 0xca4   :  { %v600_v39 = vmul.f32 %v1830_v17, %v598_v32 }
 0xca6   :  { %602 = vrot.lane.b32.xlu1 %v600_v39, %s1945_s4 }
 0xce2   :  { %v699_v38 = vpop.permute.xlu0 %698 }
 0xce3   :  { %1627 = vmatmul.mubr.msk.bf16.vlgmr.msra.gmra.mrb[12].mxu1 %vm132_vm2, %v699_v38 }
 0xce4   :  { %868 = vmatpush1.bf16.msra.mxu1 %v2021_v34  ;;  %899 = vmatprep.mubr.bf16.mxu1 %v1948_v36 }
 0xce5   :  { %869 = vmatprep.subr.bf16.mxu1 %v2023_v35 }
 0xce8   :  { %870 = vmatpush1.bf16.msra.mxu1 %v2028_v37 }
 0xce9   :  { %1034 = vmatprep.subr.bf16.mxu1 %v2019_v33 }
 0xd18   :  { %v603_v40 = vpop.permute.xlu1 %602 }
 0xd19   :  { %v2159_v41 = vadd.f32 %v1832_v24, %v603_v40 }
 0xd1b   :  { %v606_v42 = vpack.c.bf16 %v2159_v41, %v2159_v41 }
 0xd1d   :  { %608 = vrot.lane.b32.xlu0 %v606_v42, %s1947_s7 }
 0xd8f   :  { %v609_v43 = vpop.permute.xlu0 %608 }
 0xd90   :  { %1711 = vmatmul.mubr.msk.bf16.vlgmr.msra.gmra.mrb[12].mxu0 %vm132_vm2, %v609_v43 }
 0xd91   :  { %1715 = vmatpush3.bf16.msra.mxu0 %v2074_v30  ;;  %1718 = vmatprep.mubr.msk.bf16.mxu0 %vm1944_vm0, %v1943_v1 }
 0xd92   :  { %1716 = vmatprep.subr.bf16.mxu0 %v1943_v1 }
 0xd95   :  { %1717 = vmatpush3.bf16.msra.mxu0 %v2077_v31 }
 0xd96   :  { %1722 = vmatprep.subr.bf16.mxu0 %v1943_v1 }
 0xdb6   :  { %v737_v44 = vpop.f32.mrb[12].mxu1 }
 0xdb7   :  { %v738_v45 = vadd.f32 %v737_v44, %v1994_v10  ;;  %v739_v46 = vpop.f32.mrb[13].mxu1 }
 0xdb8   :  { %v740_v47 = vadd.f32 %v739_v46, %v1996_v11  ;;  %v741_v48 = vpop.f32.mrb[14].mxu1 }
 0xdb9   :  { %v742_v49 = vpop.f32.mrb[15].mxu1  ;;  %822 = vrot.lane.b32.xlu1 %v738_v45, %s1945_s4 }
 0xdba   :  { %824 = vrot.lane.b32.xlu0 %v740_v47, %s1945_s4 }
 0xdbd   :  { %835 = vrot.lane.b32.xlu1 %v740_v47, %s1946_s5 }
 0xe2b   :  { %v823_v50 = vpop.permute.xlu1 %822 }
 0xe2c   :  { %v825_v51 = vpop.permute.xlu0 %824 }
 0xe2d   :  { %v826_v52 = vsel %vm132_vm2, %v823_v50, %v825_v51 }
 0xe2e   :  { %v828_v53 = vadd.f32 %v826_v52, %v2013_v20 }
 0xe2f   :  { %v836_v58 = vpop.permute.xlu1 %835 }
 0xe30   :  { %v1630_v54 = vmul.f32 -1.442695, %v828_v53 }
 0xe32   :  { %1833 = vpow2.f32 %v1630_v54 }
 0xe3c   :  { %v1834_v55 = vpop.eup %1833 }
 0xe3d   :  { %v832_v56 = vadd.f32 1.0, %v1834_v55 }
 0xe3f   :  { %1835 = vrcp.f32 %v832_v56 }
 0xe49   :  { %v1836_v57 = vpop.eup %1835 }
 0xe4a   :  { %v838_v59 = vmul.f32 %v1836_v57, %v836_v58 }
 0xe4c   :  { %840 = vrot.lane.b32.xlu0 %v838_v59, %s1947_s7 }
 0xe63   :  { %v647_v60 = vpop.f32.mrb[12].mxu0 }
 0xe64   :  { %v648_v61 = vadd.f32 %v647_v60, %v2054_v5  ;;  %v1712_v62 = vpop.f32.mrb[13].mxu0 }
 0xe65   :  { %v650_v63 = vpop.f32.mrb[14].mxu0 }
 0xe66   :  { %752 = vrot.lane.b32.xlu1 %v648_v61, %s1947_s7  ;;  %v1713_v0 = vpop.f32.mrb[15].mxu0  ;;  %v744_v2 = vadd.f32 %v738_v45, %v648_v61 }
 0xe68   :  { %v1628_v3 = vmul.f32 -1.442695, %v744_v2 }
 0xe6a   :  { %1837 = vpow2.f32 %v1628_v3 }
 0xe74   :  { %v1838_v7 = vpop.eup %1837 }
 0xe75   :  { %v748_v8 = vadd.f32 1.0, %v1838_v7 }
 0xebe   :  { %v841_v4 = vpop.permute.xlu0 %840 }
 0xebf   :  { %v843_v6 = vadd.f32 %v841_v4, %v2013_v20 }
 0xec1   :  { %1839 = vtanh.f32 %v843_v6 }
 0xec2   :  { %1841 = vrcp.f32 %v748_v8 }
 0xecb   :  { %v1840_v9 = vpop.eup %1839 }
 0xecc   :  { %v846_v12 = vrot.slane %v1840_v9, 2  ;;  %v1842_v15 = vpop.eup %1841 }
 0xece   :  { %v848_v13 = vsub.f32 %v2147_v27, %v846_v12 }
 0xed0   :  { %v850_v14 = vrot.slane %v848_v13, 6 }
 0xed2   :  { %851 = vrot.lane.b32.xlu0 %v850_v14, %s1946_s5 }
 0xed8   :  { %v753_v17 = vpop.permute.xlu1 %752 }
 0xed9   :  { %v755_v18 = vmul.f32 %v1842_v15, %v753_v17 }
 0xedb   :  { %757 = vrot.lane.b32.xlu1 %v755_v18, %s1947_s7 }
 0xf44   :  { %v852_v21 = vpop.permute.xlu0 %851 }
 0xf45   :  { %v854_v22 = vmul.f32 %v1836_v57, %v852_v21 }
 0xf47   :  { %856 = vrot.lane.b32.xlu0 %v854_v22, %s1945_s4 }
 0xf4d   :  { %v758_v16 = vpop.permute.xlu1 %757 }
 0xf4e   :  { %v760_v19 = vadd.f32 %v758_v16, %v738_v45 }
 0xf50   :  { %1843 = vtanh.f32 %v760_v19 }
 0xf5a   :  { %v1844_v23 = vpop.eup %1843 }
 0xf5b   :  { %v762_v24 = vsub.f32 %v2159_v41, %v1844_v23 }
 0xf5d   :  { %764 = vrot.lane.b32.xlu1 %v762_v24, %s1946_s5 }
 0xfb9   :  { %v857_v25 = vpop.permute.xlu0 %856 }
 0xfba   :  { %v2188_v26 = vadd.f32 %v1840_v9, %v857_v25 }
 0xfbc   :  { %v860_v27 = vpack.c.bf16 %v2188_v26, %v2188_v26 }
 0xfbe   :  { %862 = vrot.lane.b32.xlu0 %v860_v27, %s1947_s7 }
 0xfcf   :  { %v765_v28 = vpop.permute.xlu1 %764 }
 0xfd0   :  { %v767_v29 = vmul.f32 %v1842_v15, %v765_v28 }
 0xfd2   :  { %769 = vrot.lane.b32.xlu1 %v767_v29, %s1945_s4 }
0x1030   :  { %v863_v32 = vpop.permute.xlu0 %862 }
0x1031   :  { %1631 = vmatmul.mubr.msk.bf16.vlgmr.msra.gmra.mrb[16].mxu1 %vm132_vm2, %v863_v32 }
0x1032   :  { %1035 = vmatpush1.bf16.msra.mxu1 %v2021_v34  ;;  %1066 = vmatprep.mubr.bf16.mxu1 %v1948_v36 }
0x1033   :  { %1036 = vmatprep.subr.bf16.mxu1 %v2023_v35 }
0x1036   :  { %1037 = vmatpush1.bf16.msra.mxu1 %v2028_v37 }
0x1037   :  { %1201 = vmatprep.subr.bf16.mxu1 %v2019_v33 }
0x1044   :  { %v770_v39 = vpop.permute.xlu1 %769 }
0x1045   :  { %v2200_v38 = vadd.f32 %v1844_v23, %v770_v39 }
0x1047   :  { %v773_v40 = vpack.c.bf16 %v2200_v38, %v2200_v38 }
0x1049   :  { %775 = vrot.lane.b32.xlu0 %v773_v40, %s1947_s7 }
0x10bb   :  { %v776_v41 = vpop.permute.xlu0 %775 }
0x10bc   :  { %1719 = vmatmul.mubr.msk.bf16.vlgmr.msra.gmra.mrb[16].mxu0 %vm132_vm2, %v776_v41 }
0x10bd   :  { %1723 = vmatpush3.bf16.msra.mxu0 %v2074_v30  ;;  %1726 = vmatprep.mubr.msk.bf16.mxu0 %vm1944_vm0, %v1943_v1 }
0x10be   :  { %1724 = vmatprep.subr.bf16.mxu0 %v1943_v1 }
0x10c1   :  { %1725 = vmatpush3.bf16.msra.mxu0 %v2077_v31 }
0x10c2   :  { %1730 = vmatprep.subr.bf16.mxu0 %v1943_v1 }
0x1104   :  { %v901_v42 = vpop.f32.mrb[16].mxu1 }
0x1105   :  { %v902_v43 = vadd.f32 %v901_v42, %v1994_v10  ;;  %v903_v44 = vpop.f32.mrb[17].mxu1 }
0x1106   :  { %v904_v45 = vadd.f32 %v903_v44, %v1996_v11  ;;  %v905_v46 = vpop.f32.mrb[18].mxu1 }
0x1107   :  { %v906_v47 = vpop.f32.mrb[19].mxu1  ;;  %v986_v48 = vrot.slane %v902_v43, 6 }
0x1108   :  { %v987_v49 = vrot.slane %v904_v45, 6 }
0x1109   :  { %988 = vrot.lane.b32.xlu1 %v986_v48, %s1945_s4 }
0x110a   :  { %990 = vrot.lane.b32.xlu0 %v987_v49, %s1945_s4 }
0x110d   :  { %1001 = vrot.lane.b32.xlu1 %v987_v49, %s1946_s5 }
0x117b   :  { %v989_v50 = vpop.permute.xlu1 %988 }
0x117c   :  { %v991_v51 = vpop.permute.xlu0 %990 }
0x117d   :  { %v992_v52 = vsel %vm132_vm2, %v989_v50, %v991_v51 }
0x117e   :  { %v994_v53 = vadd.f32 %v992_v52, %v2013_v20 }
0x117f   :  { %v1002_v63 = vpop.permute.xlu1 %1001 }
0x1180   :  { %v1634_v54 = vmul.f32 -1.442695, %v994_v53 }
0x1182   :  { %1845 = vpow2.f32 %v1634_v54 }
0x118c   :  { %v1846_v55 = vpop.eup %1845 }
0x118d   :  { %v998_v56 = vadd.f32 1.0, %v1846_v55 }
0x118f   :  { %v814_v57 = vpop.f32.mrb[16].mxu0  ;;  %1847 = vrcp.f32 %v998_v56 }
0x1190   :  { %v815_v58 = vadd.f32 %v814_v57, %v2054_v5  ;;  %v1720_v59 = vpop.f32.mrb[17].mxu0 }
0x1191   :  { %v817_v60 = vpop.f32.mrb[18].mxu0 }
0x1192   :  { %916 = vrot.lane.b32.xlu0 %v815_v58, %s1947_s7  ;;  %v1721_v61 = vpop.f32.mrb[19].mxu0  ;;  %v908_v2 = vadd.f32 %v902_v43, %v815_v58 }
0x1194   :  { %v1632_v3 = vmul.f32 -1.442695, %v908_v2 }
0x1196   :  { %1849 = vpow2.f32 %v1632_v3 }
0x1199   :  { %v1848_v62 = vpop.eup %1847 }
0x119a   :  { %v1004_v0 = vmul.f32 %v1848_v62, %v1002_v63 }
0x119c   :  { %1006 = vrot.lane.b32.xlu1 %v1004_v0, %s1947_s7 }
0x11a0   :  { %v1850_v4 = vpop.eup %1849 }
0x11a1   :  { %v912_v6 = vadd.f32 1.0, %v1850_v4 }
0x11a3   :  { %1851 = vrcp.f32 %v912_v6 }
0x11ad   :  { %v1852_v7 = vpop.eup %1851 }
0x1204   :  { %v917_v8 = vpop.permute.xlu0 %916 }
0x1205   :  { %v919_v9 = vmul.f32 %v1852_v7, %v917_v8 }
0x1207   :  { %921 = vrot.lane.b32.xlu0 %v919_v9, %s1947_s7 }
0x120e   :  { %v1007_v12 = vpop.permute.xlu1 %1006 }
0x120f   :  { %v1009_v13 = vadd.f32 %v1007_v12, %v2013_v20 }
0x1211   :  { %1853 = vtanh.f32 %v1009_v13 }
0x121b   :  { %v1854_v14 = vpop.eup %1853 }
0x121c   :  { %v1012_v15 = vrot.slane %v1854_v14, 2 }
0x121e   :  { %v1014_v17 = vsub.f32 %v2188_v26, %v1012_v15 }
0x1220   :  { %v1016_v18 = vrot.slane %v1014_v17, 6 }
0x1222   :  { %1017 = vrot.lane.b32.xlu1 %v1016_v18, %s1946_s5 }
0x1279   :  { %v922_v21 = vpop.permute.xlu0 %921 }
0x127a   :  { %v924_v22 = vadd.f32 %v922_v21, %v902_v43 }
0x127c   :  { %1855 = vtanh.f32 %v924_v22 }
0x1286   :  { %v1856_v16 = vpop.eup %1855 }
0x1287   :  { %v926_v19 = vsub.f32 %v2200_v38, %v1856_v16 }
0x1289   :  { %928 = vrot.lane.b32.xlu0 %v926_v19, %s1946_s5 }
0x1294   :  { %v1018_v23 = vpop.permute.xlu1 %1017 }
0x1295   :  { %v1020_v24 = vmul.f32 %v1848_v62, %v1018_v23 }
0x1297   :  { %1022 = vrot.lane.b32.xlu1 %v1020_v24, %s1945_s4 }
0x12fb   :  { %v929_v25 = vpop.permute.xlu0 %928 }
0x12fc   :  { %v931_v27 = vmul.f32 %v1852_v7, %v929_v25 }
0x12fe   :  { %933 = vrot.lane.b32.xlu0 %v931_v27, %s1945_s4 }
0x1309   :  { %v1023_v26 = vpop.permute.xlu1 %1022 }
0x130a   :  { %v2230_v28 = vadd.f32 %v1854_v14, %v1023_v26 }
0x130c   :  { %v1026_v29 = vpack.c.bf16 %v2230_v28, %v2230_v28 }
0x130e   :  { %v1028_v32 = vrot.slane %v1026_v29, 1 }
0x1310   :  { %1029 = vrot.lane.b32.xlu1 %v1028_v32, %s1947_s7 }
0x1370   :  { %v934_v39 = vpop.permute.xlu0 %933 }
0x1371   :  { %v2235_v38 = vadd.f32 %v1856_v16, %v934_v39 }
0x1373   :  { %v937_v40 = vpack.c.bf16 %v2235_v38, %v2235_v38 }
0x1375   :  { %939 = vrot.lane.b32.xlu0 %v937_v40, %s1947_s7 }
0x1382   :  { %v1030_v41 = vpop.permute.xlu1 %1029 }
0x1383   :  { %1635 = vmatmul.mubr.msk.bf16.vlgmr.msra.gmra.mrb[20].mxu1 %vm132_vm2, %v1030_v41 }
0x1384   :  { %1202 = vmatpush1.bf16.msra.mxu1 %v2021_v34  ;;  %1233 = vmatprep.mubr.bf16.mxu1 %v1948_v36 }
0x1385   :  { %1203 = vmatprep.subr.bf16.mxu1 %v2023_v35 }
0x1388   :  { %1204 = vmatpush1.bf16.msra.mxu1 %v2028_v37 }
0x1389   :  { %1368 = vmatprep.subr.bf16.mxu1 %v2019_v33 }
0x13e7   :  { %v940_v42 = vpop.permute.xlu0 %939 }
0x13e8   :  { %1727 = vmatmul.mubr.msk.bf16.vlgmr.msra.gmra.mrb[20].mxu0 %vm132_vm2, %v940_v42 }
0x13e9   :  { %1731 = vmatpush3.bf16.msra.mxu0 %v2074_v30  ;;  %1734 = vmatprep.mubr.msk.bf16.mxu0 %vm1944_vm0, %v1943_v1 }
0x13ea   :  { %1732 = vmatprep.subr.bf16.mxu0 %v1943_v1 }
0x13ed   :  { %1733 = vmatpush3.bf16.msra.mxu0 %v2077_v31 }
0x13ee   :  { %1738 = vmatprep.subr.bf16.mxu0 %v1943_v1 }
0x1456   :  { %v1068_v43 = vpop.f32.mrb[20].mxu1 }
0x1457   :  { %v1069_v44 = vadd.f32 %v1068_v43, %v1994_v10  ;;  %v1070_v45 = vpop.f32.mrb[21].mxu1 }
0x1458   :  { %v1071_v33 = vadd.f32 %v1070_v45, %v1996_v11  ;;  %v1072_v46 = vpop.f32.mrb[22].mxu1 }
0x1459   :  { %v1073_v47 = vpop.f32.mrb[23].mxu1  ;;  %v1153_v48 = vrot.slane %v1069_v44, 4 }
0x145a   :  { %v1154_v49 = vrot.slane %v1071_v33, 4 }
0x145b   :  { %1155 = vrot.lane.b32.xlu1 %v1153_v48, %s1945_s4 }
0x145c   :  { %1157 = vrot.lane.b32.xlu0 %v1154_v49, %s1945_s4 }
0x145f   :  { %1168 = vrot.lane.b32.xlu1 %v1154_v49, %s1946_s5 }
0x14bb   :  { %v978_v50 = vpop.f32.mrb[20].mxu0 }
0x14bc   :  { %v979_v51 = vadd.f32 %v978_v50, %v2054_v5  ;;  %v1728_v52 = vpop.f32.mrb[21].mxu0 }
0x14bd   :  { %v981_v53 = vpop.f32.mrb[22].mxu0 }
0x14be   :  { %1083 = vrot.lane.b32.xlu0 %v979_v51, %s1947_s7  ;;  %v1729_v54 = vpop.f32.mrb[23].mxu0  ;;  %v1075_v2 = vadd.f32 %v1069_v44, %v979_v51 }
0x14c0   :  { %v1636_v3 = vmul.f32 -1.442695, %v1075_v2 }
0x14cd   :  { %v1156_v55 = vpop.permute.xlu1 %1155 }
0x14ce   :  { %v1158_v56 = vpop.permute.xlu0 %1157 }
0x14cf   :  { %v1159_v57 = vsel %vm132_vm2, %v1156_v55, %v1158_v56 }
0x14d0   :  { %v1161_v58 = vadd.f32 %v1159_v57, %v2013_v20 }
0x14d1   :  { %v1169_v63 = vpop.permute.xlu1 %1168 }
0x14d2   :  { %v1638_v59 = vmul.f32 -1.442695, %v1161_v58 }
0x14d4   :  { %1857 = vpow2.f32 %v1638_v59 }
0x14de   :  { %v1858_v60 = vpop.eup %1857 }
0x14df   :  { %v1165_v61 = vadd.f32 1.0, %v1858_v60 }
0x14e1   :  { %1859 = vrcp.f32 %v1165_v61 }
0x14e2   :  { %1861 = vpow2.f32 %v1636_v3 }
0x14eb   :  { %v1860_v62 = vpop.eup %1859 }
0x14ec   :  { %v1171_v0 = vmul.f32 %v1860_v62, %v1169_v63  ;;  %v1862_v4 = vpop.eup %1861 }
0x14ed   :  { %v1079_v6 = vadd.f32 1.0, %v1862_v4 }
0x14ee   :  { %1173 = vrot.lane.b32.xlu1 %v1171_v0, %s1947_s7 }
0x14ef   :  { %1863 = vrcp.f32 %v1079_v6 }
0x14f9   :  { %v1864_v7 = vpop.eup %1863 }
0x1530   :  { %v1084_v8 = vpop.permute.xlu0 %1083 }
0x1531   :  { %v1086_v9 = vmul.f32 %v1864_v7, %v1084_v8 }
0x1533   :  { %1088 = vrot.lane.b32.xlu0 %v1086_v9, %s1947_s7 }
0x1560   :  { %v1174_v12 = vpop.permute.xlu1 %1173 }
0x1561   :  { %v1176_v13 = vadd.f32 %v1174_v12, %v2013_v20 }
0x1563   :  { %1865 = vtanh.f32 %v1176_v13 }
0x156d   :  { %v1866_v14 = vpop.eup %1865 }
0x156e   :  { %v1179_v15 = vrot.slane %v1866_v14, 2 }
0x1570   :  { %v1181_v17 = vsub.f32 %v2230_v28, %v1179_v15 }
0x1572   :  { %v1183_v18 = vrot.slane %v1181_v17, 6 }
0x1574   :  { %1184 = vrot.lane.b32.xlu1 %v1183_v18, %s1946_s5 }
0x15a5   :  { %v1089_v21 = vpop.permute.xlu0 %1088 }
0x15a6   :  { %v1091_v22 = vadd.f32 %v1089_v21, %v1069_v44 }
0x15a8   :  { %1867 = vtanh.f32 %v1091_v22 }
0x15b2   :  { %v1868_v16 = vpop.eup %1867 }
0x15b3   :  { %v1093_v19 = vsub.f32 %v2235_v38, %v1868_v16 }
0x15b5   :  { %1095 = vrot.lane.b32.xlu0 %v1093_v19, %s1946_s5 }
0x15e6   :  { %v1185_v23 = vpop.permute.xlu1 %1184 }
0x15e7   :  { %v1187_v24 = vmul.f32 %v1860_v62, %v1185_v23 }
0x15e9   :  { %1189 = vrot.lane.b32.xlu1 %v1187_v24, %s1945_s4 }
0x1627   :  { %v1096_v25 = vpop.permute.xlu0 %1095 }
0x1628   :  { %v1098_v27 = vmul.f32 %v1864_v7, %v1096_v25 }
0x162a   :  { %1100 = vrot.lane.b32.xlu0 %v1098_v27, %s1945_s4 }
0x165b   :  { %v1190_v26 = vpop.permute.xlu1 %1189 }
0x165c   :  { %v2271_v28 = vadd.f32 %v1866_v14, %v1190_v26 }
0x165e   :  { %v1193_v29 = vpack.c.bf16 %v2271_v28, %v2271_v28 }
0x1660   :  { %v1195_v32 = vrot.slane %v1193_v29, 2 }
0x1662   :  { %1196 = vrot.lane.b32.xlu1 %v1195_v32, %s1947_s7 }
0x169c   :  { %v1101_v39 = vpop.permute.xlu0 %1100 }
0x169d   :  { %v2276_v38 = vadd.f32 %v1868_v16, %v1101_v39 }
0x169f   :  { %v1104_v40 = vpack.c.bf16 %v2276_v38, %v2276_v38 }
0x16a1   :  { %1106 = vrot.lane.b32.xlu0 %v1104_v40, %s1947_s7 }
0x16d4   :  { %v1197_v41 = vpop.permute.xlu1 %1196 }
0x16d5   :  { %1639 = vmatmul.mubr.msk.bf16.vlgmr.msra.gmra.mrb[24].mxu1 %vm132_vm2, %v1197_v41 }
0x16d6   :  { %1369 = vmatpush1.bf16.msra.mxu1 %v2021_v34  ;;  %1400 = vmatprep.mubr.bf16.mxu1 %v1948_v36 }
0x16d7   :  { %1370 = vmatprep.subr.bf16.mxu1 %v2023_v35 }
0x16da   :  { %1371 = vmatpush1.bf16.msra.mxu1 %v2028_v37 }
0x16db   :  { %1758 = vmatprep.subr.bf16.mxu1 %v1943_v1 }
0x1713   :  { %v1107_v42 = vpop.permute.xlu0 %1106 }
0x1714   :  { %1735 = vmatmul.mubr.msk.bf16.vlgmr.msra.gmra.mrb[24].mxu0 %vm132_vm2, %v1107_v42 }
0x1715   :  { %1739 = vmatpush3.bf16.msra.mxu0 %v2074_v30  ;;  %1742 = vmatprep.mubr.msk.bf16.mxu0 %vm1944_vm0, %v1943_v1 }
0x1716   :  { %1740 = vmatprep.subr.bf16.mxu0 %v1943_v1 }
0x1719   :  { %1741 = vmatpush3.bf16.msra.mxu0 %v2077_v31 }
0x171a   :  { %1746 = vmatprep.subr.bf16.mxu0 %v1943_v1 }
0x17a8   :  { %v1235_v34 = vpop.f32.mrb[24].mxu1 }
0x17a9   :  { %v1236_v35 = vadd.f32 %v1235_v34, %v1994_v10  ;;  %v1237_v36 = vpop.f32.mrb[25].mxu1 }
0x17aa   :  { %v1238_v37 = vadd.f32 %v1237_v36, %v1996_v11  ;;  %v1239_v43 = vpop.f32.mrb[26].mxu1 }
0x17ab   :  { %v1240_v44 = vpop.f32.mrb[27].mxu1  ;;  %v1320_v45 = vrot.slane %v1236_v35, 2 }
0x17ac   :  { %v1321_v33 = vrot.slane %v1238_v37, 2 }
0x17ad   :  { %1322 = vrot.lane.b32.xlu1 %v1320_v45, %s1945_s4 }
0x17ae   :  { %1324 = vrot.lane.b32.xlu0 %v1321_v33, %s1945_s4 }
0x17b2   :  { %1335 = vrot.lane.b32.xlu0 %v1321_v33, %s1946_s5 }
0x17e7   :  { %v1145_v30 = vpop.f32.mrb[24].mxu0 }
0x17e8   :  { %v1146_v31 = vadd.f32 %v1145_v30, %v2054_v5  ;;  %v1736_v46 = vpop.f32.mrb[25].mxu0 }
0x17e9   :  { %v1148_v47 = vpop.f32.mrb[26].mxu0 }
0x17ea   :  { %1250 = vrot.lane.b32.xlu1 %v1146_v31, %s1947_s7  ;;  %v1737_v48 = vpop.f32.mrb[27].mxu0  ;;  %v1242_v55 = vadd.f32 %v1236_v35, %v1146_v31 }
0x17ec   :  { %v1640_v56 = vmul.f32 -1.442695, %v1242_v55 }
0x181f   :  { %v1323_v49 = vpop.permute.xlu1 %1322 }
0x1820   :  { %v1325_v11 = vpop.permute.xlu0 %1324 }
0x1821   :  { %v1326_v50 = vsel %vm132_vm2, %v1323_v49, %v1325_v11  ;;  %v1786_v49 = vld [vmem:[#allocation2 + $0x60] ss:$8 sps:$4 sm:$0xff]  }
0x1822   :  { %v1328_v51 = vadd.f32 %v1326_v50, %v2013_v20  ;;  %v1787_v50 = vld [vmem:[#allocation2 + $0x70] ss:$8 sps:$4 sm:$0xff]  }
0x1824   :  { %v1642_v52 = vmul.f32 -1.442695, %v1328_v51  ;;  %v1336_v5 = vpop.permute.xlu0 %1335 }
0x1826   :  { %1869 = vpow2.f32 %v1642_v52  ;;  %v1788_v52 = vld [vmem:[#allocation2 + $0x80] ss:$8 sps:$4 sm:$0xff]  }
0x1830   :  { %v1870_v53 = vpop.eup %1869 }
0x1831   :  { %v1332_v54 = vadd.f32 1.0, %v1870_v53  ;;  %v1789_v53 = vld [vmem:[#allocation2 + $0x90] ss:$8 sps:$4 sm:$0xff]  }
0x1833   :  { %1871 = vrcp.f32 %v1332_v54 }
0x1834   :  { %1873 = vpow2.f32 %v1640_v56 }
0x183d   :  { %v1872_v57 = vpop.eup %1871 }
0x183e   :  { %v1338_v58 = vmul.f32 %v1872_v57, %v1336_v5  ;;  %v1874_v59 = vpop.eup %1873 }
0x183f   :  { %v1246_v60 = vadd.f32 1.0, %v1874_v59 }
0x1840   :  { %1340 = vrot.lane.b32.xlu0 %v1338_v58, %s1947_s7 }
0x1841   :  { %1875 = vrcp.f32 %v1246_v60 }
0x184b   :  { %v1876_v61 = vpop.eup %1875 }
0x185c   :  { %v1251_v62 = vpop.permute.xlu1 %1250 }
0x185d   :  { %v1253_v63 = vmul.f32 %v1876_v61, %v1251_v62  ;;  %v56_v62 = vld [vmem:[%s2359_s2 + $0x3] ss:$0 sm:$0xff] }
0x185f   :  { %1255 = vrot.lane.b32.xlu1 %v1253_v63, %s1947_s7 }
0x18b2   :  { %v1341_v0 = vpop.permute.xlu0 %1340 }
0x18b3   :  { %v1343_v2 = vadd.f32 %v1341_v0, %v2013_v20 }
0x18b5   :  { %1877 = vtanh.f32 %v1343_v2 }
0x18bf   :  { %v1878_v3 = vpop.eup %1877 }
0x18c0   :  { %v1346_v4 = vrot.slane %v1878_v3, 2 }
0x18c2   :  { %v1348_v6 = vsub.f32 %v2271_v28, %v1346_v4 }
0x18c4   :  { %v1350_v7 = vrot.slane %v1348_v6, 6 }
0x18c6   :  { %1351 = vrot.lane.b32.xlu0 %v1350_v7, %s1946_s5  ;;  %v57_v7 = vld [vmem:[%s2359_s2 + $0x4] ss:$0 sm:$0xff] }
0x18d1   :  { %v1256_v8 = vpop.permute.xlu1 %1255 }
0x18d2   :  { %v1258_v9 = vadd.f32 %v1256_v8, %v1236_v35 }
0x18d4   :  { %1879 = vtanh.f32 %v1258_v9 }
0x18de   :  { %v1880_v12 = vpop.eup %1879 }
0x18df   :  { %v1260_v13 = vsub.f32 %v2276_v38, %v1880_v12  ;;  %v1891_v38 = vld [vmem:[%s2359_s2 + $0x2] ss:$0 sm:$0xff]  ;;  %s1949_s2 = smov [#allocation5]  }
0x18e0   :  { %s1596_s16 = sshll.u32 %s1949_s2, 4  ;;  %s1597_s16 = int_to_ptr.vmem [resolvable:$true] %s1596_s16 }
0x18e1   :  { %1262 = vrot.lane.b32.xlu1 %v1260_v13, %s1946_s5  ;;  %s1914_s17 = scalar_lea.vmem %s1597_s16, 32  ;;  %p1919_p9 = scmp.lt.s32.totalorder %s1597_s16, %s1597_s16 }
0x18e2   :  { %p1915_p8 = scmp.ne.s32.totalorder %s1597_s16, %s1914_s17  ;;  %p1920_p10 = scmp.lt.s32.totalorder %s1914_s17, %s1914_s17 }
0x18e4   :  { %p1921_p11 = por %p1920_p10, %p1919_p9 }
0x18e6   :  { %p1922_p12 = pnand %p1921_p11, %p1915_p8 }
0x1938   :  { %v1352_v14 = vpop.permute.xlu0 %1351 }
0x1939   :  { %v1354_v15 = vmul.f32 %v1872_v57, %v1352_v14 }
0x193b   :  { %1356 = vrot.lane.b32.xlu0 %v1354_v15, %s1945_s4 }
0x1953   :  { %v1263_v20 = vpop.permute.xlu1 %1262 }
0x1954   :  { %v1265_v17 = vmul.f32 %v1876_v61, %v1263_v20  ;;  %v1790_v61 = vld [vmem:[#allocation2 + $0xa0] ss:$8 sps:$4 sm:$0xff]  }
0x1956   :  { %1267 = vrot.lane.b32.xlu1 %v1265_v17, %s1945_s4 }
0x19ad   :  { %v1357_v18 = vpop.permute.xlu0 %1356 }
0x19ae   :  { %v1359_v21 = vadd.f32 %v1878_v3, %v1357_v18 }
0x19b0   :  { %v1360_v22 = vpack.c.bf16 %v1359_v21, %v1359_v21 }
0x19b2   :  { %v1362_v16 = vrot.slane %v1360_v22, 3 }
0x19b4   :  { %1363 = vrot.lane.b32.xlu0 %v1362_v16, %s1947_s7 }
0x19c8   :  { %v1268_v19 = vpop.permute.xlu1 %1267 }
0x19c9   :  { %v1270_v23 = vadd.f32 %v1880_v12, %v1268_v19 }
0x19cb   :  { %v1271_v24 = vpack.c.bf16 %v1270_v23, %v1270_v23 }
0x19cd   :  { %1273 = vrot.lane.b32.xlu1 %v1271_v24, %s1947_s7 }
0x1a26   :  { %v1364_v25 = vpop.permute.xlu0 %1363 }
0x1a27   :  { %1643 = vmatmul.mubr.msk.bf16.vlgmr.msra.gmra.mrb[28].mxu1 %vm132_vm2, %v1364_v25 }
0x1a28   :  { %1762 = vmatprep.mubr.msk.bf16.mxu1 %vm1944_vm0, %v1943_v1  ;;  %1759 = vmatpush3.bf16.msra.mxu1 %v1789_v53 }
0x1a29   :  { %1760 = vmatprep.subr.bf16.mxu1 %v1943_v1 }
0x1a2c   :  { %1761 = vmatpush3.bf16.msra.mxu1 %v1790_v61 }
0x1a3f   :  { %v1274_v27 = vpop.permute.xlu1 %1273 }
0x1a40   :  { %1743 = vmatmul.mubr.msk.bf16.vlgmr.msra.gmra.mrb[28].mxu0 %vm132_vm2, %v1274_v27 }
0x1a41   :  { %1754 = vmatprep.mubr.msk.bf16.mxu0 %vm1944_vm0, %v1943_v1 }
0x1afa   :  { %v1402_v26 = vpop.f32.mrb[28].mxu1 }
0x1afb   :  { %v1404_v28 = vpop.f32.mrb[29].mxu1  ;;  %v1403_v35 = vadd.f32 %v1402_v26, %v1994_v10  ;;  %v1785_v10 = vld [vmem:[#allocation2 + $0x50] ss:$8 sps:$4 sm:$0xff]  }
0x1afc   :  { %v1405_v29 = vpop.f32.mrb[30].mxu1  ;;  %1747 = vmatpush3.bf16.msra.mxu0 %v1785_v10 }
0x1afd   :  { %v1406_v32 = vpop.f32.mrb[31].mxu1  ;;  %1748 = vmatprep.subr.bf16.mxu0 %v1943_v1 }
0x1b00   :  { %1749 = vmatpush3.bf16.msra.mxu0 %v1786_v49 }
0x1b01   :  { %1750 = vmatprep.subr.bf16.mxu0 %v1943_v1 }
0x1b04   :  { %1751 = vmatpush3.bf16.msra.mxu0 %v1787_v50 }
0x1b05   :  { %1752 = vmatprep.subr.bf16.mxu0 %v1943_v1 }
0x1b08   :  { %1753 = vmatpush3.bf16.msra.mxu0 %v1788_v52 }
0x1b13   :  { %v1312_v39 = vpop.f32.mrb[28].mxu0 }
0x1b14   :  { %v1313_v40 = vadd.f32 %v1891_v38, %v1312_v39  ;;  %v1744_v41 = vpop.f32.mrb[29].mxu0 }
0x1b15   :  { %v1315_v42 = vpop.f32.mrb[30].mxu0 }
0x1b16   :  { %1416 = vrot.lane.b32.xlu1 %v1313_v40, %s1947_s7  ;;  %v1745_v34 = vpop.f32.mrb[31].mxu0  ;;  %v1408_v36 = vadd.f32 %v1403_v35, %v1313_v40 }
0x1b18   :  { %v1644_v37 = vmul.f32 -1.442695, %v1408_v36 }
0x1b1a   :  { %1881 = vpow2.f32 %v1644_v37 }
0x1b24   :  { %v1882_v43 = vpop.eup %1881 }
0x1b25   :  { %v1412_v44 = vadd.f32 1.0, %v1882_v43 }
0x1b27   :  { %1883 = vrcp.f32 %v1412_v44 }
0x1b31   :  { %v1884_v45 = vpop.eup %1883 }
0x1b88   :  { %v1417_v33 = vpop.permute.xlu1 %1416 }
0x1b89   :  { %v1419_v30 = vmul.f32 %v1884_v45, %v1417_v33 }
0x1b8b   :  { %1421 = vrot.lane.b32.xlu0 %v1419_v30, %s1947_s7 }
0x1bfd   :  { %v1422_v31 = vpop.permute.xlu0 %1421 }
0x1bfe   :  { %v1424_v46 = vadd.f32 %v1422_v31, %v1403_v35 }
0x1c00   :  { %1885 = vtanh.f32 %v1424_v46 }
0x1c0a   :  { %v1886_v47 = vpop.eup %1885 }
0x1c0b   :  { %v1426_v48 = vsub.f32 %v1270_v23, %v1886_v47 }
0x1c0d   :  { %1428 = vrot.lane.b32.xlu1 %v1426_v48, %s1946_s5 }
0x1c11   :  { %1438 = vrot.lane.b32.xlu1 %v1359_v21, %s1947_s7 }
0x1c7f   :  { %v1429_v11 = vpop.permute.xlu1 %1428 }
0x1c80   :  { %v1431_v51 = vmul.f32 %v1884_v45, %v1429_v11 }
0x1c82   :  { %1433 = vrot.lane.b32.xlu0 %v1431_v51, %s1945_s4 }
0x1c83   :  { %v1439_v57 = vpop.permute.xlu1 %1438 }
0x1cf4   :  { %v1434_v54 = vpop.permute.xlu0 %1433 }
0x1cf5   :  { %v1436_v55 = vadd.f32 %v1886_v47, %v1434_v54 }
0x1cf7   :  { %v1442_v56 = vrot.slane %v1436_v55, 2 }
0x1cf9   :  { %1443 = vrot.lane.b32.xlu0 %v1442_v56, %s1946_s5 }
0x1d6b   :  { %v1444_v5 = vpop.permute.xlu0 %1443 }
0x1d6c   :  { %v1446_v58 = vsel %vm132_vm2, %v1439_v57, %v1444_v5 }
0x1d6d   :  { %v1447_v59 = vpack.c.bf16 %v1446_v58, %v1446_v58 }
0x1d6f   :  { %v1449_v60 = vrot.slane %v1447_v59, 3 }
0x1d71   :  { %1755 = vmatmul.mubr.msk.bf16.vlgmr.msra.gmra.mrb[32].mxu0 %vm1474_vm3, %v1449_v60 }
0x1e44   :  { %v1512_v63 = vpop.f32.mrb[32].mxu0 }
0x1e45   :  { %v1513_v1 = vadd.f32 %v1512_v63, %v56_v62  ;;  %v1756_v0 = vpop.f32.mrb[33].mxu0 }
0x1e46   :  { %v1515_v2 = vpop.f32.mrb[34].mxu0 }
0x1e47   :  { %v1518_v3 = vmax.f32 %v1513_v1, 0.0  ;;  %v1757_v4 = vpop.f32.mrb[35].mxu0 }
0x1e49   :  { %v1519_v6 = vpack.c.bf16 %v1518_v3, %v1518_v3 }
0x1e4b   :  { %1763 = vmatmul.mubr.msk.bf16.vlgmr.msra.gmra.mrb[32].mxu1 %vm132_vm2, %v1519_v6 }
0x1f1e   :  { %v1569_v8 = vpop.f32.mrb[32].mxu1 }
0x1f1f   :  { %v1570_v9 = vadd.f32 %v1569_v8, %v57_v7  ;;  %v1764_v12 = vpop.f32.mrb[33].mxu1 }
0x1f20   :  { %v1572_v13 = vpop.f32.mrb[34].mxu1 }
0x1f21   :  { %v1765_v14 = vpop.f32.mrb[35].mxu1  ;;  %v1576_v15 = vsel %vm1575_vm4, %v1570_v9, -inf }
0x1f22   :  { %1577 = vmax.xlane.f32.xlu1 %v1576_v15 }
0x1faf   :  { %v1578_v20 = vpop.xlane.xlu1 %1577 }
0x1fb0   :  { %v1579_v17 = vsub.f32 %v1570_v9, %v1578_v20 }
0x1fb2   :  { %v1580_v18 = vmul.f32 1.442695, %v1579_v17 }
0x1fb4   :  { %1887 = vpow2.f32 %v1580_v18 }
0x1fbe   :  { %v1888_v21 = vpop.eup %1887 }
0x1fbf   :  { %v1582_v22 = vsel %vm1575_vm4, %v1888_v21, 0.0 }
0x1fc0   :  { %1583 = vadd.xlane.f32.xlu0 %v1582_v22 }
0x204d   :  { %v1584_v16 = vpop.xlane.xlu0 %1583 }
0x204e   :  { %1889 = vlog2.f32 %v1584_v16 }
0x2058   :  { %v1890_v19 = vpop.eup %1889 }
0x2059   :  { %v1586_v23 = vmul.f32 0.6931472, %v1890_v19 }
0x205b   :  { %v1587_v24 = vadd.f32 %v1586_v23, %v1578_v20 }
0x205d   :  { %v1588_v25 = vsub.f32 %v1570_v9, %v1587_v24 }
0x205f   :  { %1589 = vst.msk [vmem:[#allocation5] sm:$0x3] %vm1575_vm4, %v1588_v25 }
0x2060   :  { %1925 = shalt.err (!%p1922_p12)
}
0x2061   :  { %s1926_s20 = scalar_lea.hbm %s2360_s3, 32 }
0x2062   :  { %p1927_p13 = scmp.ne.s32.totalorder %s2360_s3, %s1926_s20  ;;  %p1930_p0 = scmp.lt.u32.totalorder %s1926_s20, %s2360_s3 }
0x2064   :  { %p1932_p1 = pnand %p1930_p0, %p1927_p13 }
0x2066   :  { %1935 = shalt.err (!%p1932_p1)
}
0x2067   :  { %1599 = dma.vmem_to_hbm [thread:$0]  %s1597_s16, 32, %s2360_s3, [#allocation4]  }
0x2068   :  { %1938 = dma.done.wait [#allocation4], 32  }
0x2069   :  { %1939 = vsyncadd [#allocation4], 4294967264 }
0x206a   :  { %1603 = vsyncpa [#allocation3], 1 }
0x206b   :  { %1604 = vsyncpa [#allocation4], 1 }

</bundles_post_ra>
